<compile_context>
chip_gen: v6e
topology: v6e:2x2x1
jax: 0.10.0
libtpu: 0.0.40
codegen_flags: <defaults>
</compile_context>

<pallas_src>
import functools
import math

import jax
import jax.numpy as jnp
from jax import lax
from jax.experimental import pallas as pl
from jax.experimental.pallas import tpu as pltpu


# ----------------------------- helpers (traced inside the kernel) -------------

def _layernorm(x, w, b, eps):
    # x: (T, E) f32, w/b: (1, E) f32. Biased variance, matches torch LayerNorm.
    u = jnp.mean(x, axis=-1, keepdims=True)
    d = x - u                                # computed once, reused (VALU saving)
    s = jnp.mean(d * d, axis=-1, keepdims=True)
    return w * (d * lax.rsqrt(s + eps)) + b


def _gelu(x):
    # gelu_new / tanh approximation (tanh goes to the EUP slot).
    c = math.sqrt(2.0 / math.pi)
    return 0.5 * x * (1.0 + jnp.tanh(c * (x + 0.044715 * x * x * x)))


# ----------------------------- fused full-stack kernel ------------------------

def gpt2_stack_kernel(x_ref,
                      ln1_w_ref, ln1_b_ref,
                      w_attn_ref, b_attn_ref,
                      w_proj_ref, b_proj_ref,
                      ln2_w_ref, ln2_b_ref,
                      w_fc_ref, b_fc_ref,
                      w_proj2_ref, b_proj2_ref,
                      lnf_w_ref, lnf_b_ref,
                      h_ref, kv_ref,
                      *, batch, seq, n_head, eps):
    layer = pl.program_id(0)
    n_layer = pl.num_programs(0)

    T, E = x_ref.shape                    # T = batch * seq tokens
    B, S, H = batch, seq, n_head
    Dh = E // H
    bf16 = jnp.bfloat16

    # ---- layer 0: seed the residual stream from the embeddings ---------------
    @pl.when(layer == 0)
    def _():
        h_ref[...] = x_ref[...]

    x = h_ref[...]                        # (T, E) f32 residual stream (VMEM-resident)

    # ---- LN1 + c_attn: one (T, E) @ (E, 3E) bf16 MXU matmul, f32 accumulation -
    h1 = _layernorm(x, ln1_w_ref[...], ln1_b_ref[...], eps)
    qkv = jnp.dot(h1.astype(bf16), w_attn_ref[...],
                  preferred_element_type=jnp.float32) + b_attn_ref[...]   # (T, 3E) f32
    q = qkv[:, :E]
    k = qkv[:, E:2 * E]
    v = qkv[:, 2 * E:]

    # ---- present (KV cache): lane-dense (2, T, E), heads packed on lanes ------
    kv_ref[0] = k
    kv_ref[1] = v

    # ---- attention -------------------------------------------------------------
    # Head split: H full-batch lane slices + tile-aligned leading-dim reshapes
    # (one retile total), NOT B*H per-(batch, head) copies.
    def split_heads(t):                   # (T, E) f32 -> (H*B, S, Dh) f32
        th = jnp.stack([t[:, h * Dh:(h + 1) * Dh] for h in range(H)], axis=0)  # (H, T, Dh)
        return th.reshape(H * B, S, Dh)   # split T=B*S on a sublane-tile boundary

    q3, k3, v3 = split_heads(q), split_heads(k), split_heads(v)

    scale = 1.0 / math.sqrt(Dh)
    # QK^T with no materialized transpose, batched over all (head, batch) groups.
    scores = jnp.einsum("gqd,gkd->gqk",
                        q3.astype(bf16), k3.astype(bf16),
                        preferred_element_type=jnp.float32) * scale        # (G,S,S) f32

    row = lax.broadcasted_iota(jnp.int32, (S, S), 0)
    col = lax.broadcasted_iota(jnp.int32, (S, S), 1)
    causal = row >= col
    # Same result as the reference's  w * b - 1e10 * (1 - b), in one vselect.
    scores = jnp.where(causal[None, :, :], scores, -1e10)

    # Softmax stats in f32; exact reciprocal (bit-closer to the torch softmax).
    scores = scores - jnp.max(scores, axis=-1, keepdims=True)
    p = jnp.exp(scores)
    p = p * pl.reciprocal(jnp.sum(p, axis=-1, keepdims=True), approx=False)

    ctx = jnp.einsum("gqk,gkd->gqd",
                     p.astype(bf16), v3.astype(bf16),
                     preferred_element_type=jnp.float32)                   # (G,S,Dh) f32

    # Merge heads: leading-dim reshapes + one H-way lane concatenate (one retile).
    ctx = ctx.reshape(H, B, S, Dh).reshape(H, T, Dh)
    a = jnp.concatenate([ctx[h] for h in range(H)], axis=-1)               # (T, E) f32

    # ---- c_proj + residual ----
    a = jnp.dot(a.astype(bf16), w_proj_ref[...],
                preferred_element_type=jnp.float32) + b_proj_ref[...]
    x = x + a

    # ---- LN2 + MLP (gelu) + residual ----
    h2 = _layernorm(x, ln2_w_ref[...], ln2_b_ref[...], eps)
    hfc = jnp.dot(h2.astype(bf16), w_fc_ref[...],
                  preferred_element_type=jnp.float32) + b_fc_ref[...]      # (T, 4E) f32
    hfc = _gelu(hfc)
    m = jnp.dot(hfc.astype(bf16), w_proj2_ref[...],
                preferred_element_type=jnp.float32) + b_proj2_ref[...]
    y = x + m

    # ---- carry the residual stream to the next layer --------------------------
    h_ref[...] = y

    # ---- final LayerNorm fused into the last layer's epilogue -----------------
    @pl.when(layer == n_layer - 1)
    def _():
        h_ref[...] = _layernorm(y, lnf_w_ref[...], lnf_b_ref[...], eps)


# ----------------------------- parameter init (stacked layers) ----------------

def init_params(key, *, vocab_size, n_positions, n_embd, n_layer):
    E, L = n_embd, n_layer
    ks = jax.random.split(key, 6)

    def w_bf16(k, shape):
        return (0.02 * jax.random.normal(k, shape, jnp.float32)).astype(jnp.bfloat16)

    return {
        # embeddings stay f32 (gather + add is XLA-side glue)
        "wte": 0.02 * jax.random.normal(ks[0], (vocab_size, E), jnp.float32),
        "wpe": 0.02 * jax.random.normal(ks[1], (n_positions, E), jnp.float32),
        # per-layer weights, stacked on a leading L axis for the layer grid
        "ln1_w": jnp.ones((L, 1, E), jnp.float32),
        "ln1_b": jnp.zeros((L, 1, E), jnp.float32),
        "w_attn": w_bf16(ks[2], (L, E, 3 * E)),
        "b_attn": jnp.zeros((L, 1, 3 * E), jnp.float32),
        "w_proj": w_bf16(ks[3], (L, E, E)),
        "b_proj": jnp.zeros((L, 1, E), jnp.float32),
        "ln2_w": jnp.ones((L, 1, E), jnp.float32),
        "ln2_b": jnp.zeros((L, 1, E), jnp.float32),
        "w_fc": w_bf16(ks[4], (L, E, 4 * E)),
        "b_fc": jnp.zeros((L, 1, 4 * E), jnp.float32),
        "w_proj2": w_bf16(ks[5], (L, 4 * E, E)),
        "b_proj2": jnp.zeros((L, 1, E), jnp.float32),
        # final LayerNorm (passed once, DMA'd once)
        "ln_f_w": jnp.ones((1, E), jnp.float32),
        "ln_f_b": jnp.zeros((1, E), jnp.float32),
    }


# ----------------------------- forward ----------------------------------------

@functools.partial(jax.jit, static_argnames=("n_head", "eps"))
def gpt2_forward(params, input_ids, *, n_head, eps):
    # Matches the PyTorch forward with past=None, token_type_ids=None.
    B, S = input_ids.shape
    E = params["wte"].shape[-1]
    L = params["w_attn"].shape[0]
    H = n_head
    Dh = E // H
    T = B * S

    # Embedding gathers stay in plain JAX (glue).
    position_ids = jnp.arange(S, dtype=jnp.int32)
    hidden = params["wte"][input_ids] + params["wpe"][position_ids][None, :, :]
    tokens = hidden.reshape(T, E).astype(jnp.float32)     # token-major, lane-dense E

    def per_layer(shape):                 # stacked (L, *shape) weight, streamed per layer
        return pl.BlockSpec((None,) + shape, lambda l: (l,) + (0,) * len(shape))

    def whole(shape):                     # constant block -> DMA'd exactly once
        return pl.BlockSpec(shape, lambda l: (0,) * len(shape))

    kernel = functools.partial(gpt2_stack_kernel, batch=B, seq=S, n_head=H, eps=eps)

    hidden_out, presents = pl.pallas_call(
        kernel,
        grid=(L,),
        in_specs=[
            whole((T, E)),                                   # embeddings (read at l==0)
            per_layer((1, E)), per_layer((1, E)),            # ln_1
            per_layer((E, 3 * E)), per_layer((1, 3 * E)),    # c_attn
            per_layer((E, E)), per_layer((1, E)),            # attn c_proj
            per_layer((1, E)), per_layer((1, E)),            # ln_2
            per_layer((E, 4 * E)), per_layer((1, 4 * E)),    # mlp c_fc
            per_layer((4 * E, E)), per_layer((1, E)),        # mlp c_proj
            whole((1, E)), whole((1, E)),                    # ln_f (once, last layer only)
        ],
        out_specs=(
            # revisited block == VMEM-resident residual-stream carrier across layers
            pl.BlockSpec((T, E), lambda l: (0, 0)),
            # per-layer lane-dense presents, written back once per layer
            pl.BlockSpec((None, 2, T, E), lambda l: (l, 0, 0, 0)),
        ),
        out_shape=(
            jax.ShapeDtypeStruct((T, E), jnp.float32),
            jax.ShapeDtypeStruct((L, 2, T, E), jnp.float32),
        ),
        compiler_params=pltpu.CompilerParams(
            dimension_semantics=("arbitrary",),              # layers are sequential
            vmem_limit_bytes=48 * 1024 * 1024,               # fits v7x's 64 MiB/TC budget
        ),
    )(tokens,
      params["ln1_w"], params["ln1_b"],
      params["w_attn"], params["b_attn"],
      params["w_proj"], params["b_proj"],
      params["ln2_w"], params["ln2_b"],
      params["w_fc"], params["b_fc"],
      params["w_proj2"], params["b_proj2"],
      params["ln_f_w"], params["ln_f_b"])

    # presents: packed lane-dense (L, 2, T, E) -> torch layout (2, B, H, S, Dh)
    # with ONE reshape+transpose for the whole stack (not one per layer).
    presents = jnp.transpose(presents.reshape(L, 2, B, S, H, Dh), (0, 1, 2, 4, 3, 5))
    presents_list = [presents[i] for i in range(L)]

    return hidden_out.reshape(B, S, E), presents_list


# ----------------------------- main -------------------------------------------

if __name__ == "__main__":
    # Small GPT-2-like config (E chosen = 128 so all kernel stores are lane-dense).
    vocab_size = 50
    n_positions = 16
    n_embd = 128
    n_head = 4
    n_layer = 3
    layer_norm_epsilon = 1e-5

    B, S = 2, 8

    root = jax.random.PRNGKey(0)
    k_params, k_ids = jax.random.split(root)

    params = init_params(k_params, vocab_size=vocab_size,
                         n_positions=n_positions, n_embd=n_embd,
                         n_layer=n_layer)
    input_ids = jax.random.randint(k_ids, (B, S), 0, vocab_size, dtype=jnp.int32)

    hidden, presents = gpt2_forward(params, input_ids,
                                    n_head=n_head, eps=layer_norm_epsilon)
    jax.block_until_ready(hidden)
    jax.block_until_ready(presents)

    assert hidden.shape == (B, S, n_embd)
    assert len(presents) == n_layer
    assert all(p.shape == (2, B, n_head, S, n_embd // n_head) for p in presents)
    print("KERNEL_OK")
</pallas_src>

<mosaic_0001>
module attributes {stable_mosaic.version = 11 : i64} {
  func.func @gpt2_stack_kernel(%arg0: i32, %arg1: memref<16x128xf32, #tpu.memory_space<vmem>>, %arg2: memref<1x1x128xf32, #tpu.memory_space<vmem>>, %arg3: memref<1x1x128xf32, #tpu.memory_space<vmem>>, %arg4: memref<1x128x384xbf16, #tpu.memory_space<vmem>>, %arg5: memref<1x1x384xf32, #tpu.memory_space<vmem>>, %arg6: memref<1x128x128xbf16, #tpu.memory_space<vmem>>, %arg7: memref<1x1x128xf32, #tpu.memory_space<vmem>>, %arg8: memref<1x1x128xf32, #tpu.memory_space<vmem>>, %arg9: memref<1x1x128xf32, #tpu.memory_space<vmem>>, %arg10: memref<1x128x512xbf16, #tpu.memory_space<vmem>>, %arg11: memref<1x1x512xf32, #tpu.memory_space<vmem>>, %arg12: memref<1x512x128xbf16, #tpu.memory_space<vmem>>, %arg13: memref<1x1x128xf32, #tpu.memory_space<vmem>>, %arg14: memref<1x128xf32, #tpu.memory_space<vmem>>, %arg15: memref<1x128xf32, #tpu.memory_space<vmem>>, %arg16: memref<16x128xf32, #tpu.memory_space<vmem>>, %arg17: memref<1x2x16x128xf32, #tpu.memory_space<vmem>>) attributes {dimension_semantics = [#tpu.dimension_semantics<arbitrary>], iteration_bounds = array<i64: 3>, scalar_prefetch = 0 : i64, scratch_operands = 0 : i64, tpu.core_type = #tpu.core_type<tc>, window_params = [{pipeline_mode = #tpu.pipeline_mode<synchronous>, transform_indices = @transform_0, window_bounds = array<i64: 16, 128>}, {transform_indices = @transform_1, window_bounds = array<i64: 1, 1, 128>}, {transform_indices = @transform_2, window_bounds = array<i64: 1, 1, 128>}, {transform_indices = @transform_3, window_bounds = array<i64: 1, 128, 384>}, {transform_indices = @transform_4, window_bounds = array<i64: 1, 1, 384>}, {transform_indices = @transform_5, window_bounds = array<i64: 1, 128, 128>}, {transform_indices = @transform_6, window_bounds = array<i64: 1, 1, 128>}, {transform_indices = @transform_7, window_bounds = array<i64: 1, 1, 128>}, {transform_indices = @transform_8, window_bounds = array<i64: 1, 1, 128>}, {transform_indices = @transform_9, window_bounds = array<i64: 1, 128, 512>}, {transform_indices = @transform_10, window_bounds = array<i64: 1, 1, 512>}, {transform_indices = @transform_11, window_bounds = array<i64: 1, 512, 128>}, {transform_indices = @transform_12, window_bounds = array<i64: 1, 1, 128>}, {pipeline_mode = #tpu.pipeline_mode<synchronous>, transform_indices = @transform_13, window_bounds = array<i64: 1, 128>}, {pipeline_mode = #tpu.pipeline_mode<synchronous>, transform_indices = @transform_14, window_bounds = array<i64: 1, 128>}, {pipeline_mode = #tpu.pipeline_mode<synchronous>, transform_indices = @transform_15, window_bounds = array<i64: 16, 128>}, {transform_indices = @transform_16, window_bounds = array<i64: 1, 2, 16, 128>}]} {
    %c0_i32 = arith.constant 0 : i32
    %0 = arith.cmpi eq, %arg0, %c0_i32 : i32
    %1 = arith.extui %0 : i1 to i32
    %c0_i32_0 = arith.constant 0 : i32
    %2 = arith.cmpi ne, %1, %c0_i32_0 : i32
    scf.if %2 {
      %c0_71 = arith.constant 0 : index
      %c0_72 = arith.constant 0 : index
      %179 = vector.load %arg1[%c0_71, %c0_72] : memref<16x128xf32, #tpu.memory_space<vmem>>, vector<16x128xf32>
      %c0_73 = arith.constant 0 : index
      %c0_74 = arith.constant 0 : index
      %180 = vector.load %arg16[%c0_73, %c0_74] : memref<16x128xf32, #tpu.memory_space<vmem>>, vector<16x128xf32>
      tpu.vector_store %arg16[%c0_73, %c0_74], %179 {strides = array<i32>} : memref<16x128xf32, #tpu.memory_space<vmem>>, vector<16x128xf32>,
    } else {
    }
    %c0 = arith.constant 0 : index
    %c0_1 = arith.constant 0 : index
    %3 = vector.load %arg16[%c0, %c0_1] : memref<16x128xf32, #tpu.memory_space<vmem>>, vector<16x128xf32>
    %c0_2 = arith.constant 0 : index
    %c0_3 = arith.constant 0 : index
    %c0_4 = arith.constant 0 : index
    %4 = vector.load %arg2[%c0_2, %c0_3, %c0_4] : memref<1x1x128xf32, #tpu.memory_space<vmem>>, vector<1x1x128xf32>
    %5 = vector.shape_cast %4 : vector<1x1x128xf32> to vector<1x128xf32>
    %c0_5 = arith.constant 0 : index
    %c0_6 = arith.constant 0 : index
    %c0_7 = arith.constant 0 : index
    %6 = vector.load %arg3[%c0_5, %c0_6, %c0_7] : memref<1x1x128xf32, #tpu.memory_space<vmem>>, vector<1x1x128xf32>
    %7 = vector.shape_cast %6 : vector<1x1x128xf32> to vector<1x128xf32>
    %cst = arith.constant dense<0.000000e+00> : vector<16xf32>
    %8 = vector.multi_reduction <add>, %3, %cst [1] : vector<16x128xf32> to vector<16xf32>
    %9 = vector.shape_cast %8 : vector<16xf32> to vector<16x1xf32>
    %cst_8 = arith.constant 1.280000e+02 : f32
    %10 = vector.broadcast %cst_8 : f32 to vector<16x1xf32>
    %11 = arith.divf %9, %10 : vector<16x1xf32>
    %12 = vector.broadcast %11 : vector<16x1xf32> to vector<16x128xf32>
    %13 = arith.subf %3, %12 : vector<16x128xf32>
    %14 = arith.mulf %13, %13 : vector<16x128xf32>
    %cst_9 = arith.constant dense<0.000000e+00> : vector<16xf32>
    %15 = vector.multi_reduction <add>, %14, %cst_9 [1] : vector<16x128xf32> to vector<16xf32>
    %16 = vector.shape_cast %15 : vector<16xf32> to vector<16x1xf32>
    %cst_10 = arith.constant 1.280000e+02 : f32
    %17 = vector.broadcast %cst_10 : f32 to vector<16x1xf32>
    %18 = arith.divf %16, %17 : vector<16x1xf32>
    %cst_11 = arith.constant 9.99999974E-6 : f32
    %19 = vector.broadcast %cst_11 : f32 to vector<16x1xf32>
    %20 = arith.addf %18, %19 : vector<16x1xf32>
    %21 = math.rsqrt %20 : vector<16x1xf32>
    %22 = vector.broadcast %21 : vector<16x1xf32> to vector<16x128xf32>
    %23 = arith.mulf %13, %22 : vector<16x128xf32>
    %24 = vector.broadcast %5 : vector<1x128xf32> to vector<16x128xf32>
    %25 = arith.mulf %24, %23 : vector<16x128xf32>
    %26 = vector.broadcast %7 : vector<1x128xf32> to vector<16x128xf32>
    %27 = arith.addf %25, %26 : vector<16x128xf32>
    %28 = arith.truncf %27 : vector<16x128xf32> to vector<16x128xbf16>
    %c0_12 = arith.constant 0 : index
    %c0_13 = arith.constant 0 : index
    %c0_14 = arith.constant 0 : index
    %29 = vector.load %arg4[%c0_12, %c0_13, %c0_14] : memref<1x128x384xbf16, #tpu.memory_space<vmem>>, vector<1x128x384xbf16>
    %30 = vector.shape_cast %29 : vector<1x128x384xbf16> to vector<128x384xbf16>
    %cst_15 = arith.constant dense<0.000000e+00> : vector<16x384xf32>
    %31 = tpu.matmul %28, %30, %cst_15 {dimension_numbers = #tpu.dot_dimension_numbers<[1], [0], [0], [1], [0, 0, 1, 1], [], []>} : vector<16x128xbf16>, vector<128x384xbf16>, vector<16x384xf32> -> vector<16x384xf32>
    %c0_16 = arith.constant 0 : index
    %c0_17 = arith.constant 0 : index
    %c0_18 = arith.constant 0 : index
    %32 = vector.load %arg5[%c0_16, %c0_17, %c0_18] : memref<1x1x384xf32, #tpu.memory_space<vmem>>, vector<1x1x384xf32>
    %33 = vector.shape_cast %32 : vector<1x1x384xf32> to vector<1x384xf32>
    %34 = vector.broadcast %33 : vector<1x384xf32> to vector<16x384xf32>
    %35 = arith.addf %31, %34 : vector<16x384xf32>
    %36 = vector.extract_strided_slice %35 {offsets = [0, 0], sizes = [16, 128], strides = [1, 1]} : vector<16x384xf32> to vector<16x128xf32>
    %37 = vector.extract_strided_slice %35 {offsets = [0, 128], sizes = [16, 128], strides = [1, 1]} : vector<16x384xf32> to vector<16x128xf32>
    %38 = vector.extract_strided_slice %35 {offsets = [0, 256], sizes = [16, 128], strides = [1, 1]} : vector<16x384xf32> to vector<16x128xf32>
    %c0_19 = arith.constant 0 : index
    %c0_20 = arith.constant 0 : index
    %c0_21 = arith.constant 0 : index
    %c0_22 = arith.constant 0 : index
    %39 = vector.load %arg17[%c0_19, %c0_20, %c0_21, %c0_22] : memref<1x2x16x128xf32, #tpu.memory_space<vmem>>, vector<1x1x16x128xf32>
    %40 = vector.shape_cast %39 : vector<1x1x16x128xf32> to vector<16x128xf32>
    %41 = vector.shape_cast %37 : vector<16x128xf32> to vector<1x1x16x128xf32>
    tpu.vector_store %arg17[%c0_19, %c0_20, %c0_21, %c0_22], %41 {strides = array<i32>} : memref<1x2x16x128xf32, #tpu.memory_space<vmem>>, vector<1x1x16x128xf32>,
    %c0_23 = arith.constant 0 : index
    %c1 = arith.constant 1 : index
    %c0_24 = arith.constant 0 : index
    %c0_25 = arith.constant 0 : index
    %42 = vector.load %arg17[%c0_23, %c1, %c0_24, %c0_25] : memref<1x2x16x128xf32, #tpu.memory_space<vmem>>, vector<1x1x16x128xf32>
    %43 = vector.shape_cast %42 : vector<1x1x16x128xf32> to vector<16x128xf32>
    %44 = vector.shape_cast %38 : vector<16x128xf32> to vector<1x1x16x128xf32>
    tpu.vector_store %arg17[%c0_23, %c1, %c0_24, %c0_25], %44 {strides = array<i32>} : memref<1x2x16x128xf32, #tpu.memory_space<vmem>>, vector<1x1x16x128xf32>,
    %45 = vector.extract_strided_slice %36 {offsets = [0, 0], sizes = [16, 32], strides = [1, 1]} : vector<16x128xf32> to vector<16x32xf32>
    %46 = vector.extract_strided_slice %36 {offsets = [0, 32], sizes = [16, 32], strides = [1, 1]} : vector<16x128xf32> to vector<16x32xf32>
    %47 = vector.extract_strided_slice %36 {offsets = [0, 64], sizes = [16, 32], strides = [1, 1]} : vector<16x128xf32> to vector<16x32xf32>
    %48 = vector.extract_strided_slice %36 {offsets = [0, 96], sizes = [16, 32], strides = [1, 1]} : vector<16x128xf32> to vector<16x32xf32>
    %49 = vector.shape_cast %45 : vector<16x32xf32> to vector<1x16x32xf32>
    %50 = vector.shape_cast %46 : vector<16x32xf32> to vector<1x16x32xf32>
    %51 = vector.shape_cast %47 : vector<16x32xf32> to vector<1x16x32xf32>
    %52 = vector.shape_cast %48 : vector<16x32xf32> to vector<1x16x32xf32>
    %53 = tpu.concatenate %49, %50, %51, %52 in 0 : vector<1x16x32xf32>, vector<1x16x32xf32>, vector<1x16x32xf32>, vector<1x16x32xf32> -> vector<4x16x32xf32>
    %54 = vector.shape_cast %53 : vector<4x16x32xf32> to vector<8x8x32xf32>
    %55 = vector.extract_strided_slice %37 {offsets = [0, 0], sizes = [16, 32], strides = [1, 1]} : vector<16x128xf32> to vector<16x32xf32>
    %56 = vector.extract_strided_slice %37 {offsets = [0, 32], sizes = [16, 32], strides = [1, 1]} : vector<16x128xf32> to vector<16x32xf32>
    %57 = vector.extract_strided_slice %37 {offsets = [0, 64], sizes = [16, 32], strides = [1, 1]} : vector<16x128xf32> to vector<16x32xf32>
    %58 = vector.extract_strided_slice %37 {offsets = [0, 96], sizes = [16, 32], strides = [1, 1]} : vector<16x128xf32> to vector<16x32xf32>
    %59 = vector.shape_cast %55 : vector<16x32xf32> to vector<1x16x32xf32>
    %60 = vector.shape_cast %56 : vector<16x32xf32> to vector<1x16x32xf32>
    %61 = vector.shape_cast %57 : vector<16x32xf32> to vector<1x16x32xf32>
    %62 = vector.shape_cast %58 : vector<16x32xf32> to vector<1x16x32xf32>
    %63 = tpu.concatenate %59, %60, %61, %62 in 0 : vector<1x16x32xf32>, vector<1x16x32xf32>, vector<1x16x32xf32>, vector<1x16x32xf32> -> vector<4x16x32xf32>
    %64 = vector.shape_cast %63 : vector<4x16x32xf32> to vector<8x8x32xf32>
    %65 = vector.extract_strided_slice %38 {offsets = [0, 0], sizes = [16, 32], strides = [1, 1]} : vector<16x128xf32> to vector<16x32xf32>
    %66 = vector.extract_strided_slice %38 {offsets = [0, 32], sizes = [16, 32], strides = [1, 1]} : vector<16x128xf32> to vector<16x32xf32>
    %67 = vector.extract_strided_slice %38 {offsets = [0, 64], sizes = [16, 32], strides = [1, 1]} : vector<16x128xf32> to vector<16x32xf32>
    %68 = vector.extract_strided_slice %38 {offsets = [0, 96], sizes = [16, 32], strides = [1, 1]} : vector<16x128xf32> to vector<16x32xf32>
    %69 = vector.shape_cast %65 : vector<16x32xf32> to vector<1x16x32xf32>
    %70 = vector.shape_cast %66 : vector<16x32xf32> to vector<1x16x32xf32>
    %71 = vector.shape_cast %67 : vector<16x32xf32> to vector<1x16x32xf32>
    %72 = vector.shape_cast %68 : vector<16x32xf32> to vector<1x16x32xf32>
    %73 = tpu.concatenate %69, %70, %71, %72 in 0 : vector<1x16x32xf32>, vector<1x16x32xf32>, vector<1x16x32xf32>, vector<1x16x32xf32> -> vector<4x16x32xf32>
    %74 = vector.shape_cast %73 : vector<4x16x32xf32> to vector<8x8x32xf32>
    %75 = arith.truncf %54 : vector<8x8x32xf32> to vector<8x8x32xbf16>
    %76 = arith.truncf %64 : vector<8x8x32xf32> to vector<8x8x32xbf16>
    "tpu.trace_start"() <{level = 10 : i32, message = "gqd,gkd->gqk"}> : () -> ()
    %cst_26 = arith.constant dense<0.000000e+00> : vector<8x8x8xf32>
    %77 = tpu.matmul %75, %76, %cst_26 {dimension_numbers = #tpu.dot_dimension_numbers<[2], [2], [1], [1], [0, 0, 0, 1, 1, 1], [0], [0]>} : vector<8x8x32xbf16>, vector<8x8x32xbf16>, vector<8x8x8xf32> -> vector<8x8x8xf32>
    "tpu.trace_stop"() : () -> ()
    %cst_27 = arith.constant 0.176776692 : f32
    %78 = vector.broadcast %cst_27 : f32 to vector<8x8x8xf32>
    %79 = arith.mulf %77, %78 : vector<8x8x8xf32>
    %80 = tpu.iota {dimensions = array<i32: 0>} : vector<8x8xi32>
    %81 = tpu.iota {dimensions = array<i32: 1>} : vector<8x8xi32>
    %82 = arith.cmpi sge, %80, %81 : vector<8x8xi32>
    %83 = vector.shape_cast %82 : vector<8x8xi1> to vector<1x8x8xi1>
    %cst_28 = arith.constant -1.000000e+10 : f32
    %84 = vector.shape_cast %83 : vector<1x8x8xi1> to vector<1x8x8xi1>
    %85 = vector.broadcast %84 : vector<1x8x8xi1> to vector<8x8x8xi1>
    %86 = vector.broadcast %cst_28 : f32 to vector<8x8x8xf32>
    %87 = arith.select %85, %79, %86 : vector<8x8x8xi1>, vector<8x8x8xf32>
    %cst_29 = arith.constant dense<0xFF800000> : vector<8x8xf32>
    %88 = vector.multi_reduction <maximumf>, %87, %cst_29 [2] : vector<8x8x8xf32> to vector<8x8xf32>
    %89 = vector.shape_cast %88 : vector<8x8xf32> to vector<8x8x1xf32>
    %90 = vector.broadcast %89 : vector<8x8x1xf32> to vector<8x8x8xf32>
    %91 = arith.subf %87, %90 : vector<8x8x8xf32>
    %92 = math.exp %91 : vector<8x8x8xf32>
    %cst_30 = arith.constant dense<0.000000e+00> : vector<8x8xf32>
    %93 = vector.multi_reduction <add>, %92, %cst_30 [2] : vector<8x8x8xf32> to vector<8x8xf32>
    %94 = vector.shape_cast %93 : vector<8x8xf32> to vector<8x8x1xf32>
    %95 = tpu.reciprocal %94 : vector<8x8x1xf32> -> vector<8x8x1xf32>
    %96 = vector.broadcast %95 : vector<8x8x1xf32> to vector<8x8x8xf32>
    %97 = arith.mulf %92, %96 : vector<8x8x8xf32>
    %98 = arith.truncf %97 : vector<8x8x8xf32> to vector<8x8x8xbf16>
    %99 = arith.truncf %74 : vector<8x8x32xf32> to vector<8x8x32xbf16>
    "tpu.trace_start"() <{level = 10 : i32, message = "gqk,gkd->gqd"}> : () -> ()
    %cst_31 = arith.constant dense<0.000000e+00> : vector<8x8x32xf32>
    %100 = tpu.matmul %98, %99, %cst_31 {dimension_numbers = #tpu.dot_dimension_numbers<[2], [1], [1], [2], [0, 0, 0, 1, 1, 2], [0], [0]>} : vector<8x8x8xbf16>, vector<8x8x32xbf16>, vector<8x8x32xf32> -> vector<8x8x32xf32>
    "tpu.trace_stop"() : () -> ()
    %101 = vector.shape_cast %100 : vector<8x8x32xf32> to vector<4x2x8x32xf32>
    %102 = vector.shape_cast %101 : vector<4x2x8x32xf32> to vector<4x16x32xf32>
    %103 = vector.extract_strided_slice %102 {offsets = [0, 0, 0], sizes = [1, 16, 32], strides = [1, 1, 1]} : vector<4x16x32xf32> to vector<1x16x32xf32>
    %104 = vector.shape_cast %103 : vector<1x16x32xf32> to vector<16x32xf32>
    %105 = vector.extract_strided_slice %102 {offsets = [1, 0, 0], sizes = [1, 16, 32], strides = [1, 1, 1]} : vector<4x16x32xf32> to vector<1x16x32xf32>
    %106 = vector.shape_cast %105 : vector<1x16x32xf32> to vector<16x32xf32>
    %107 = vector.extract_strided_slice %102 {offsets = [2, 0, 0], sizes = [1, 16, 32], strides = [1, 1, 1]} : vector<4x16x32xf32> to vector<1x16x32xf32>
    %108 = vector.shape_cast %107 : vector<1x16x32xf32> to vector<16x32xf32>
    %109 = vector.extract_strided_slice %102 {offsets = [3, 0, 0], sizes = [1, 16, 32], strides = [1, 1, 1]} : vector<4x16x32xf32> to vector<1x16x32xf32>
    %110 = vector.shape_cast %109 : vector<1x16x32xf32> to vector<16x32xf32>
    %111 = tpu.concatenate %104, %106, %108, %110 in 1 : vector<16x32xf32>, vector<16x32xf32>, vector<16x32xf32>, vector<16x32xf32> -> vector<16x128xf32>
    %112 = arith.truncf %111 : vector<16x128xf32> to vector<16x128xbf16>
    %c0_32 = arith.constant 0 : index
    %c0_33 = arith.constant 0 : index
    %c0_34 = arith.constant 0 : index
    %113 = vector.load %arg6[%c0_32, %c0_33, %c0_34] : memref<1x128x128xbf16, #tpu.memory_space<vmem>>, vector<1x128x128xbf16>
    %114 = vector.shape_cast %113 : vector<1x128x128xbf16> to vector<128x128xbf16>
    %cst_35 = arith.constant dense<0.000000e+00> : vector<16x128xf32>
    %115 = tpu.matmul %112, %114, %cst_35 {dimension_numbers = #tpu.dot_dimension_numbers<[1], [0], [0], [1], [0, 0, 1, 1], [], []>} : vector<16x128xbf16>, vector<128x128xbf16>, vector<16x128xf32> -> vector<16x128xf32>
    %c0_36 = arith.constant 0 : index
    %c0_37 = arith.constant 0 : index
    %c0_38 = arith.constant 0 : index
    %116 = vector.load %arg7[%c0_36, %c0_37, %c0_38] : memref<1x1x128xf32, #tpu.memory_space<vmem>>, vector<1x1x128xf32>
    %117 = vector.shape_cast %116 : vector<1x1x128xf32> to vector<1x128xf32>
    %118 = vector.broadcast %117 : vector<1x128xf32> to vector<16x128xf32>
    %119 = arith.addf %115, %118 : vector<16x128xf32>
    %120 = arith.addf %3, %119 : vector<16x128xf32>
    %c0_39 = arith.constant 0 : index
    %c0_40 = arith.constant 0 : index
    %c0_41 = arith.constant 0 : index
    %121 = vector.load %arg8[%c0_39, %c0_40, %c0_41] : memref<1x1x128xf32, #tpu.memory_space<vmem>>, vector<1x1x128xf32>
    %122 = vector.shape_cast %121 : vector<1x1x128xf32> to vector<1x128xf32>
    %c0_42 = arith.constant 0 : index
    %c0_43 = arith.constant 0 : index
    %c0_44 = arith.constant 0 : index
    %123 = vector.load %arg9[%c0_42, %c0_43, %c0_44] : memref<1x1x128xf32, #tpu.memory_space<vmem>>, vector<1x1x128xf32>
    %124 = vector.shape_cast %123 : vector<1x1x128xf32> to vector<1x128xf32>
    %cst_45 = arith.constant dense<0.000000e+00> : vector<16xf32>
    %125 = vector.multi_reduction <add>, %120, %cst_45 [1] : vector<16x128xf32> to vector<16xf32>
    %126 = vector.shape_cast %125 : vector<16xf32> to vector<16x1xf32>
    %cst_46 = arith.constant 1.280000e+02 : f32
    %127 = vector.broadcast %cst_46 : f32 to vector<16x1xf32>
    %128 = arith.divf %126, %127 : vector<16x1xf32>
    %129 = vector.broadcast %128 : vector<16x1xf32> to vector<16x128xf32>
    %130 = arith.subf %120, %129 : vector<16x128xf32>
    %131 = arith.mulf %130, %130 : vector<16x128xf32>
    %cst_47 = arith.constant dense<0.000000e+00> : vector<16xf32>
    %132 = vector.multi_reduction <add>, %131, %cst_47 [1] : vector<16x128xf32> to vector<16xf32>
    %133 = vector.shape_cast %132 : vector<16xf32> to vector<16x1xf32>
    %cst_48 = arith.constant 1.280000e+02 : f32
    %134 = vector.broadcast %cst_48 : f32 to vector<16x1xf32>
    %135 = arith.divf %133, %134 : vector<16x1xf32>
    %cst_49 = arith.constant 9.99999974E-6 : f32
    %136 = vector.broadcast %cst_49 : f32 to vector<16x1xf32>
    %137 = arith.addf %135, %136 : vector<16x1xf32>
    %138 = math.rsqrt %137 : vector<16x1xf32>
    %139 = vector.broadcast %138 : vector<16x1xf32> to vector<16x128xf32>
    %140 = arith.mulf %130, %139 : vector<16x128xf32>
    %141 = vector.broadcast %122 : vector<1x128xf32> to vector<16x128xf32>
    %142 = arith.mulf %141, %140 : vector<16x128xf32>
    %143 = vector.broadcast %124 : vector<1x128xf32> to vector<16x128xf32>
    %144 = arith.addf %142, %143 : vector<16x128xf32>
    %145 = arith.truncf %144 : vector<16x128xf32> to vector<16x128xbf16>
    %c0_50 = arith.constant 0 : index
    %c0_51 = arith.constant 0 : index
    %c0_52 = arith.constant 0 : index
    %146 = vector.load %arg10[%c0_50, %c0_51, %c0_52] : memref<1x128x512xbf16, #tpu.memory_space<vmem>>, vector<1x128x512xbf16>
    %147 = vector.shape_cast %146 : vector<1x128x512xbf16> to vector<128x512xbf16>
    %cst_53 = arith.constant dense<0.000000e+00> : vector<16x512xf32>
    %148 = tpu.matmul %145, %147, %cst_53 {dimension_numbers = #tpu.dot_dimension_numbers<[1], [0], [0], [1], [0, 0, 1, 1], [], []>} : vector<16x128xbf16>, vector<128x512xbf16>, vector<16x512xf32> -> vector<16x512xf32>
    %c0_54 = arith.constant 0 : index
    %c0_55 = arith.constant 0 : index
    %c0_56 = arith.constant 0 : index
    %149 = vector.load %arg11[%c0_54, %c0_55, %c0_56] : memref<1x1x512xf32, #tpu.memory_space<vmem>>, vector<1x1x512xf32>
    %150 = vector.shape_cast %149 : vector<1x1x512xf32> to vector<1x512xf32>
    %151 = vector.broadcast %150 : vector<1x512xf32> to vector<16x512xf32>
    %152 = arith.addf %148, %151 : vector<16x512xf32>
    %cst_57 = arith.constant 5.000000e-01 : f32
    %153 = vector.broadcast %cst_57 : f32 to vector<16x512xf32>
    %154 = arith.mulf %153, %152 : vector<16x512xf32>
    %cst_58 = arith.constant 4.471500e-02 : f32
    %155 = vector.broadcast %cst_58 : f32 to vector<16x512xf32>
    %156 = arith.mulf %155, %152 : vector<16x512xf32>
    %157 = arith.mulf %156, %152 : vector<16x512xf32>
    %158 = arith.mulf %157, %152 : vector<16x512xf32>
    %159 = arith.addf %152, %158 : vector<16x512xf32>
    %cst_59 = arith.constant 0.797884583 : f32
    %160 = vector.broadcast %cst_59 : f32 to vector<16x512xf32>
    %161 = arith.mulf %160, %159 : vector<16x512xf32>
    %162 = math.tanh %161 : vector<16x512xf32>
    %cst_60 = arith.constant 1.000000e+00 : f32
    %163 = vector.broadcast %cst_60 : f32 to vector<16x512xf32>
    %164 = arith.addf %163, %162 : vector<16x512xf32>
    %165 = arith.mulf %154, %164 : vector<16x512xf32>
    %166 = arith.truncf %165 : vector<16x512xf32> to vector<16x512xbf16>
    %c0_61 = arith.constant 0 : index
    %c0_62 = arith.constant 0 : index
    %c0_63 = arith.constant 0 : index
    %167 = vector.load %arg12[%c0_61, %c0_62, %c0_63] : memref<1x512x128xbf16, #tpu.memory_space<vmem>>, vector<1x512x128xbf16>
    %168 = vector.shape_cast %167 : vector<1x512x128xbf16> to vector<512x128xbf16>
    %cst_64 = arith.constant dense<0.000000e+00> : vector<16x128xf32>
    %169 = tpu.matmul %166, %168, %cst_64 {dimension_numbers = #tpu.dot_dimension_numbers<[1], [0], [0], [1], [0, 0, 1, 1], [], []>} : vector<16x512xbf16>, vector<512x128xbf16>, vector<16x128xf32> -> vector<16x128xf32>
    %c0_65 = arith.constant 0 : index
    %c0_66 = arith.constant 0 : index
    %c0_67 = arith.constant 0 : index
    %170 = vector.load %arg13[%c0_65, %c0_66, %c0_67] : memref<1x1x128xf32, #tpu.memory_space<vmem>>, vector<1x1x128xf32>
    %171 = vector.shape_cast %170 : vector<1x1x128xf32> to vector<1x128xf32>
    %172 = vector.broadcast %171 : vector<1x128xf32> to vector<16x128xf32>
    %173 = arith.addf %169, %172 : vector<16x128xf32>
    %174 = arith.addf %120, %173 : vector<16x128xf32>
    %c0_68 = arith.constant 0 : index
    %c0_69 = arith.constant 0 : index
    %175 = vector.load %arg16[%c0_68, %c0_69] : memref<16x128xf32, #tpu.memory_space<vmem>>, vector<16x128xf32>
    tpu.vector_store %arg16[%c0_68, %c0_69], %174 {strides = array<i32>} : memref<16x128xf32, #tpu.memory_space<vmem>>, vector<16x128xf32>,
    %c2_i32 = arith.constant 2 : i32
    %176 = arith.cmpi eq, %arg0, %c2_i32 : i32
    %177 = arith.extui %176 : i1 to i32
    %c0_i32_70 = arith.constant 0 : i32
    %178 = arith.cmpi ne, %177, %c0_i32_70 : i32
    scf.if %178 {
      %c0_71 = arith.constant 0 : index
      %c0_72 = arith.constant 0 : index
      %179 = vector.load %arg14[%c0_71, %c0_72] : memref<1x128xf32, #tpu.memory_space<vmem>>, vector<1x128xf32>
      %c0_73 = arith.constant 0 : index
      %c0_74 = arith.constant 0 : index
      %180 = vector.load %arg15[%c0_73, %c0_74] : memref<1x128xf32, #tpu.memory_space<vmem>>, vector<1x128xf32>
      %cst_75 = arith.constant dense<0.000000e+00> : vector<16xf32>
      %181 = vector.multi_reduction <add>, %174, %cst_75 [1] : vector<16x128xf32> to vector<16xf32>
      %182 = vector.shape_cast %181 : vector<16xf32> to vector<16x1xf32>
      %cst_76 = arith.constant 1.280000e+02 : f32
      %183 = vector.broadcast %cst_76 : f32 to vector<16x1xf32>
      %184 = arith.divf %182, %183 : vector<16x1xf32>
      %185 = vector.broadcast %184 : vector<16x1xf32> to vector<16x128xf32>
      %186 = arith.subf %174, %185 : vector<16x128xf32>
      %187 = arith.mulf %186, %186 : vector<16x128xf32>
      %cst_77 = arith.constant dense<0.000000e+00> : vector<16xf32>
      %188 = vector.multi_reduction <add>, %187, %cst_77 [1] : vector<16x128xf32> to vector<16xf32>
      %189 = vector.shape_cast %188 : vector<16xf32> to vector<16x1xf32>
      %cst_78 = arith.constant 1.280000e+02 : f32
      %190 = vector.broadcast %cst_78 : f32 to vector<16x1xf32>
      %191 = arith.divf %189, %190 : vector<16x1xf32>
      %cst_79 = arith.constant 9.99999974E-6 : f32
      %192 = vector.broadcast %cst_79 : f32 to vector<16x1xf32>
      %193 = arith.addf %191, %192 : vector<16x1xf32>
      %194 = math.rsqrt %193 : vector<16x1xf32>
      %195 = vector.broadcast %194 : vector<16x1xf32> to vector<16x128xf32>
      %196 = arith.mulf %186, %195 : vector<16x128xf32>
      %197 = vector.broadcast %179 : vector<1x128xf32> to vector<16x128xf32>
      %198 = arith.mulf %197, %196 : vector<16x128xf32>
      %199 = vector.broadcast %180 : vector<1x128xf32> to vector<16x128xf32>
      %200 = arith.addf %198, %199 : vector<16x128xf32>
      %c0_80 = arith.constant 0 : index
      %c0_81 = arith.constant 0 : index
      %201 = vector.load %arg16[%c0_80, %c0_81] : memref<16x128xf32, #tpu.memory_space<vmem>>, vector<16x128xf32>
      tpu.vector_store %arg16[%c0_80, %c0_81], %200 {strides = array<i32>} : memref<16x128xf32, #tpu.memory_space<vmem>>, vector<16x128xf32>,
    } else {
    }
    return
  }
  func.func @transform_0(%arg0: i32) -> (i32, i32) {
    %c0_i32 = arith.constant 0 : i32
    %c0_i32_0 = arith.constant 0 : i32
    %c0_i32_1 = arith.constant 0 : i32
    return %c0_i32, %c0_i32_0 : i32, i32
  }
  func.func @transform_1(%arg0: i32) -> (i32, i32, i32) {
    %c0_i32 = arith.constant 0 : i32
    %c0_i32_0 = arith.constant 0 : i32
    %c0_i32_1 = arith.constant 0 : i32
    return %arg0, %c0_i32, %c0_i32_0 : i32, i32, i32
  }
  func.func @transform_2(%arg0: i32) -> (i32, i32, i32) {
    %c0_i32 = arith.constant 0 : i32
    %c0_i32_0 = arith.constant 0 : i32
    %c0_i32_1 = arith.constant 0 : i32
    return %arg0, %c0_i32, %c0_i32_0 : i32, i32, i32
  }
  func.func @transform_3(%arg0: i32) -> (i32, i32, i32) {
    %c0_i32 = arith.constant 0 : i32
    %c0_i32_0 = arith.constant 0 : i32
    %c0_i32_1 = arith.constant 0 : i32
    return %arg0, %c0_i32, %c0_i32_0 : i32, i32, i32
  }
  func.func @transform_4(%arg0: i32) -> (i32, i32, i32) {
    %c0_i32 = arith.constant 0 : i32
    %c0_i32_0 = arith.constant 0 : i32
    %c0_i32_1 = arith.constant 0 : i32
    return %arg0, %c0_i32, %c0_i32_0 : i32, i32, i32
  }
  func.func @transform_5(%arg0: i32) -> (i32, i32, i32) {
    %c0_i32 = arith.constant 0 : i32
    %c0_i32_0 = arith.constant 0 : i32
    %c0_i32_1 = arith.constant 0 : i32
    return %arg0, %c0_i32, %c0_i32_0 : i32, i32, i32
  }
  func.func @transform_6(%arg0: i32) -> (i32, i32, i32) {
    %c0_i32 = arith.constant 0 : i32
    %c0_i32_0 = arith.constant 0 : i32
    %c0_i32_1 = arith.constant 0 : i32
    return %arg0, %c0_i32, %c0_i32_0 : i32, i32, i32
  }
  func.func @transform_7(%arg0: i32) -> (i32, i32, i32) {
    %c0_i32 = arith.constant 0 : i32
    %c0_i32_0 = arith.constant 0 : i32
    %c0_i32_1 = arith.constant 0 : i32
    return %arg0, %c0_i32, %c0_i32_0 : i32, i32, i32
  }
  func.func @transform_8(%arg0: i32) -> (i32, i32, i32) {
    %c0_i32 = arith.constant 0 : i32
    %c0_i32_0 = arith.constant 0 : i32
    %c0_i32_1 = arith.constant 0 : i32
    return %arg0, %c0_i32, %c0_i32_0 : i32, i32, i32
  }
  func.func @transform_9(%arg0: i32) -> (i32, i32, i32) {
    %c0_i32 = arith.constant 0 : i32
    %c0_i32_0 = arith.constant 0 : i32
    %c0_i32_1 = arith.constant 0 : i32
    return %arg0, %c0_i32, %c0_i32_0 : i32, i32, i32
  }
  func.func @transform_10(%arg0: i32) -> (i32, i32, i32) {
    %c0_i32 = arith.constant 0 : i32
    %c0_i32_0 = arith.constant 0 : i32
    %c0_i32_1 = arith.constant 0 : i32
    return %arg0, %c0_i32, %c0_i32_0 : i32, i32, i32
  }
  func.func @transform_11(%arg0: i32) -> (i32, i32, i32) {
    %c0_i32 = arith.constant 0 : i32
    %c0_i32_0 = arith.constant 0 : i32
    %c0_i32_1 = arith.constant 0 : i32
    return %arg0, %c0_i32, %c0_i32_0 : i32, i32, i32
  }
  func.func @transform_12(%arg0: i32) -> (i32, i32, i32) {
    %c0_i32 = arith.constant 0 : i32
    %c0_i32_0 = arith.constant 0 : i32
    %c0_i32_1 = arith.constant 0 : i32
    return %arg0, %c0_i32, %c0_i32_0 : i32, i32, i32
  }
  func.func @transform_13(%arg0: i32) -> (i32, i32) {
    %c0_i32 = arith.constant 0 : i32
    %c0_i32_0 = arith.constant 0 : i32
    %c0_i32_1 = arith.constant 0 : i32
    return %c0_i32, %c0_i32_0 : i32, i32
  }
  func.func @transform_14(%arg0: i32) -> (i32, i32) {
    %c0_i32 = arith.constant 0 : i32
    %c0_i32_0 = arith.constant 0 : i32
    %c0_i32_1 = arith.constant 0 : i32
    return %c0_i32, %c0_i32_0 : i32, i32
  }
  func.func @transform_15(%arg0: i32) -> (i32, i32) {
    %c0_i32 = arith.constant 0 : i32
    %c0_i32_0 = arith.constant 0 : i32
    %c0_i32_1 = arith.constant 0 : i32
    return %c0_i32, %c0_i32_0 : i32, i32
  }
  func.func @transform_16(%arg0: i32) -> (i32, i32, i32, i32) {
    %c0_i32 = arith.constant 0 : i32
    %c0_i32_0 = arith.constant 0 : i32
    %c0_i32_1 = arith.constant 0 : i32
    %c0_i32_2 = arith.constant 0 : i32
    return %arg0, %c0_i32, %c0_i32_0, %c0_i32_1 : i32, i32, i32, i32
  }
}

</mosaic_0001>

<bundles_post_ra>
// kernel: gpt2_forward.1
= control target key start
LH: loop header
LB: loop body
LE: loop exit
PB: predicated region body
PF: predicated region fallthrough
CT: control target
= control target key end

     0   :  { %s4826_s0 = inlined_call_operand.vmem [shape: f32[16,128], index: 0, kind: input, shape index: {}]   ;;  %s4827_s1 = inlined_call_operand.vmem [shape: f32[3,1,128], index: 1, kind: input, shape index: {}]   ;;  %s4828_s2 = inlined_call_operand.vmem [shape: f32[3,1,128], index: 2, kind: input, shape index: {}]   ;;  %s4829_s3 = inlined_call_operand.hbm [shape: bf16[3,128,384], index: 3, kind: input, shape index: {}]   ;;  %s4830_s4 = inlined_call_operand.vmem [shape: f32[3,1,384], index: 4, kind: input, shape index: {}]   ;;  %s4831_s5 = inlined_call_operand.vmem [shape: bf16[3,128,128], index: 5, kind: input, shape index: {}]   ;;  %s4832_s6 = inlined_call_operand.vmem [shape: f32[3,1,128], index: 6, kind: input, shape index: {}]   ;;  %s4833_s7 = inlined_call_operand.vmem [shape: f32[3,1,128], index: 7, kind: input, shape index: {}]   ;;  %s4834_s8 = inlined_call_operand.vmem [shape: f32[3,1,128], index: 8, kind: input, shape index: {}]   ;;  %s4835_s9 = inlined_call_operand.hbm [shape: bf16[3,128,512], index: 9, kind: input, shape index: {}]   ;;  %s4836_s10 = inlined_call_operand.vmem [shape: f32[3,1,512], index: 10, kind: input, shape index: {}]   ;;  %s4837_s11 = inlined_call_operand.hbm [shape: bf16[3,512,128], index: 11, kind: input, shape index: {}]   ;;  %s4838_s12 = inlined_call_operand.vmem [shape: f32[3,1,128], index: 12, kind: input, shape index: {}]   ;;  %s4839_s13 = inlined_call_operand.vmem [shape: f32[1,128], index: 13, kind: input, shape index: {}]   ;;  %s4840_s14 = inlined_call_operand.vmem [shape: f32[1,128], index: 14, kind: input, shape index: {}]   ;;  %s4841_s15 = inlined_call_operand.hbm [shape: f32[16,128], index: 15, kind: output, shape index: {0}]   ;;  %s4842_s16 = inlined_call_operand.vmem [shape: f32[3,2,16,128], index: 16, kind: output, shape index: {1}]  }
   0x1   :  { %4851 = sst [smem:[#allocation16_spill]] %s4826_s0 }
   0x2   :  { %4852 = sst [smem:[#allocation17_spill]] %s4829_s3 }
   0x3   :  { %4853 = sst [smem:[#allocation18_spill]] %s4830_s4 }
   0x4   :  { %4854 = sst [smem:[#allocation19_spill]] %s4831_s5 }
   0x5   :  { %4855 = sst [smem:[#allocation20_spill]] %s4835_s9 }
   0x6   :  { %4856 = sst [smem:[#allocation21_spill]] %s4836_s10 }
   0x7   :  { %4857 = sst [smem:[#allocation22_spill]] %s4837_s11 }
   0x8   :  { %4858 = sst [smem:[#allocation23_spill]] %s4838_s12 }
   0x9   :  { %4859 = sst [smem:[#allocation24_spill]] %s4839_s13 }
   0xa   :  { %4860 = sst [smem:[#allocation25_spill]] %s4840_s14 }
   0xb   :  { %4861 = sst [smem:[#allocation26_spill]] %s4841_s15 }
   0xc   :  { %4862 = sst [smem:[#allocation27_spill]] %s4842_s16 }
   0xd   :  { %22 = vsyncpa [#allocation3], 0 }
   0xe   :  { %24 = vsyncpa [#allocation3 + $0x1], 0 }
   0xf   :  { %25 = vsyncpa [#allocation6], 0 }
  0x10   :  { %27 = vsyncpa [#allocation6 + $0x1], 0 }
  0x11   :  { %28 = vsyncpa [#allocation4], 0  ;;  %s4148_s21 = smov 0   ;;  %s4150_s22 = smov 0  }
  0x12   :  { %s4152_s23 = smov 0   ;;  %s4154_s24 = smov 0  }
  0x13 LB: > { %4863 = sst [smem:[#allocation12_spill]] %s4035_s22  ;;  %s4167_s25 = sadd.s32 4294967295, %s4043_s24   ;;  %s4043_s24 = sphi %s4154_s24, %s4893_s24   ;;  %s4039_s23 = sphi %s4152_s23, %s4896_s23   ;;  %s4035_s22 = sphi %s4150_s22, %s4895_s22   ;;  %s4031_s21 = sphi %s4148_s21, %s4894_s21  }
  0x14   : > { %4864 = sst [smem:[#allocation13_spill]] %s4039_s23  ;;  %s4170_s26 = sadd.s32 1, %s4043_s24  }
  0x15   : > { %4865 = sst [smem:[#allocation14_spill]] %s4170_s26  ;;  %s111_s27 = ssub.s32 %s4043_s24, %s4170_s26 }
  0x16   : > { %s114_s28 = sadd.s32 1, %s4039_s23  ;;  %p112_p0 = scmp.eq.s32.totalorder %s111_s27, 0 }
  0x17   : > { %p121_p1 = scmp.ne.s32.totalorder %s4039_s23, %s4035_s22  ;;  %p122_p2 = scmp.eq.s32.totalorder %s4043_s24, 0 }
  0x18   : > { %p127_p3 = scmp.ne.s32.totalorder %s4035_s22, %s4031_s21  ;;  %p128_p5 = scmp.eq.s32.totalorder %s4167_s25, 0 }
  0x19   : > { %s4180_s29 = scalar_select %p112_p0, %s4039_s23, %s114_s28  }
  0x1a   : > { %p123_p4 = por %p122_p2, %p121_p1  ;;  %p3606_p6 = scmp.lt.s32.totalorder %s4043_s24, 3 }
  0x1b   : > { %4866 = sst [smem:[#allocation15_spill]] %s4180_s29  ;;  %p4184_p7 = por %p128_p5, %p127_p3 }
  0x1c   : > { %s4189_s0 = sand.u32 1, %s4039_s23   ;;  %p4191_p8 = pnand %p3606_p6, %p123_p4 }
  0x1d   : > { %s4867_s30 = scalar_select %p4184_p7, 1, 0 }
  0x1e   : > { %s549_s18 = sand.u32 1, %s4043_s24   ;;  %s4847_s19 = sshll.u32 %s4189_s0, 8 }
  0x1f   : > { %s4848_s20 = sshll.u32 %s4043_s24, 12  ;;  %s553_s21 = scalar_lea.vmem [#allocation5], %s4847_s19 }
  0x20   : > { %s560_s27 = sshll.u32 %s553_s21, 4  ;;  %s4869_s9 = sld [smem:[#allocation20_spill]]  ;;  %s4207_s27 = int_to_ptr.vmem [resolvable:$true] %s560_s27 }
  0x21   : > { %s4209_s23 = scalar_lea.sflag [#allocation6], %s549_s18  ;;  %p4215_p10 = pneg %p4191_p8 }
  0x26   : > { %s4205_s26 = scalar_lea.hbm %s4869_s9, %s4848_s20  ;;  %s3898_s28 = scalar_lea.hbm %s4869_s9, 12288 }
  0x27   : > { %s3893_s15 = scalar_lea.hbm %s4205_s26, 4096  ;;  %p3899_p13 = scmp.lt.s32.totalorder %s4205_s26, %s4869_s9 }
  0x28   : > { %p3894_p9 = scmp.ne.s32.totalorder %s4205_s26, %s3893_s15  ;;  %p3900_p0 = scmp.lt.s32.totalorder %s3898_s28, %s3893_s15 }
  0x2a   : > { %p3896_p11 = pnand %p4215_p10, %p3894_p9  ;;  %p3901_p1 = por %p3900_p0, %p3899_p13 }
  0x2c   : > { %p3897_p12 = pneg %p3896_p11 }
  0x2e   : > { %p3902_p2 = pnand %p3901_p1, %p3897_p12 }
  0x30   : > { %3905 = shalt.err (!%p3902_p2)
}
  0x31   : > { %s3906_s18 = scalar_lea.vmem %s4207_s27, 4096  ;;  %s4045_s13 = smov [#allocation5]  }
  0x32   : > { %p3907_p3 = scmp.ne.s32.totalorder %s4207_s27, %s3906_s18  ;;  %s3911_s29 = sshll.u32 %s4045_s13, 4  ;;  %s3912_s29 = int_to_ptr.vmem [resolvable:$false] %s3911_s29 }
  0x33   : > { %s3913_s21 = scalar_lea.vmem %s3912_s29, 8192  ;;  %p3914_p6 = scmp.lt.s32.totalorder %s4207_s27, %s3912_s29 }
  0x34   : > { %p3909_p4 = pnand %p3907_p3, %p4215_p10  ;;  %p3915_p9 = scmp.lt.s32.totalorder %s3913_s21, %s3906_s18 }
  0x36   : > { %p3910_p5 = pneg %p3909_p4  ;;  %p3916_p11 = por %p3915_p9, %p3914_p6 }
  0x38   : > { %p3917_p7 = pnand %p3916_p11, %p3910_p5 }
  0x3a   : > { %3920 = shalt.err (!%p3917_p7)
}
  0x3b   : > { %s4046_s15 = smov 256   ;;  %s4047_s13 = smov 16  }
  0x3c   : > { %3602 = dma.hbm_to_vmem [thread:$0]  (!%p4191_p8), %s4205_s26, 4096, %s4207_s27, %s4209_s23, %s4046_s15, %s4046_s15, %s4047_s13  }
  0x3d   : > { %s4871_s19 = sshll.u32 %s4043_s24, 12  ;;  %s4872_s11 = sld [smem:[#allocation22_spill]] }
  0x3e   : > { %s4873_s29 = sshll.u32 %s4189_s0, 8  ;;  %p3212_p7 = scmp.ge.s32.totalorder %s4043_s24, 1 }
  0x3f   : > { %s581_s21 = scalar_lea.vmem [#allocation7], %s4873_s29  ;;  %p602_p12 = scmp.lt.s32.totalorder %s4043_s24, 4 }
  0x40   : > { %s588_s9 = sshll.u32 %s581_s21, 4  ;;  %s3582_s16 = smul.u32 192, %s4189_s0  ;;  %s4248_s9 = int_to_ptr.vmem [resolvable:$true] %s588_s9 }
  0x41   : > { %p4252_p13 = pnand %p3212_p7, %p602_p12  ;;  %s3583_s26 = smul.u32 3072, %s4043_s24 }
  0x42   : > { %s4875_s3 = sld [smem:[#allocation17_spill]]  ;;  %s496_s28 = scalar_lea.sflag [#allocation3], %s4189_s0 }
  0x43   : > { %s4243_s18 = scalar_lea.hbm %s4872_s11, %s4871_s19  ;;  %s499_s19 = scalar_lea.vmem [#allocation2], %s3582_s16 }
  0x44   : > { %s4874_s12 = scalar_select %p4252_p13, 1, 0 }
  0x45   : > { %s506_s20 = sshll.u32 %s499_s19, 4  ;;  %s4262_s20 = int_to_ptr.vmem [resolvable:$true] %s506_s20 }
  0x48   : > { %s4260_s13 = scalar_lea.hbm %s4875_s3, %s3583_s26  ;;  %s3926_s10 = scalar_lea.hbm %s4875_s3, 9216 }
  0x49   : > { %s3921_s29 = scalar_lea.hbm %s4260_s13, 3072  ;;  %p3927_p3 = scmp.lt.s32.totalorder %s4260_s13, %s4875_s3 }
  0x4a   : > { %p3922_p0 = scmp.ne.s32.totalorder %s4260_s13, %s3921_s29  ;;  %p3928_p4 = scmp.lt.s32.totalorder %s3926_s10, %s3921_s29 }
  0x4c   : > { %p3924_p1 = pnand %p3922_p0, %p4215_p10  ;;  %p3929_p5 = por %p3928_p4, %p3927_p3 }
  0x4e   : > { %p3925_p2 = pneg %p3924_p1 }
  0x50   : > { %p3930_p6 = pnand %p3929_p5, %p3925_p2 }
  0x52   : > { %3933 = shalt.err (!%p3930_p6)
}
  0x53   : > { %s3934_s16 = scalar_lea.vmem %s4262_s20, 3072  ;;  %s4048_s15 = smov [#allocation2]  }
  0x54   : > { %p3935_p9 = scmp.ne.s32.totalorder %s4262_s20, %s3934_s16  ;;  %s3939_s19 = sshll.u32 %s4048_s15, 4  ;;  %s3940_s19 = int_to_ptr.vmem [resolvable:$false] %s3939_s19 }
  0x55   : > { %s3941_s21 = scalar_lea.vmem %s3940_s19, 6144  ;;  %p3942_p12 = scmp.lt.s32.totalorder %s4262_s20, %s3940_s19 }
  0x56   : > { %p3937_p11 = pnand %p3935_p9, %p4215_p10  ;;  %p3943_p0 = scmp.lt.s32.totalorder %s3941_s21, %s3934_s16 }
  0x58   : > { %p3938_p7 = pneg %p3937_p11  ;;  %p3944_p1 = por %p3943_p0, %p3942_p12 }
  0x5a   : > { %p3945_p13 = pnand %p3944_p1, %p3938_p7 }
  0x5c   : > { %3948 = shalt.err (!%p3945_p13)
}
  0x5d   : > { %s4049_s10 = smov 192   ;;  %s4050_s29 = smov 12  }
  0x5e   : > { %3599 = dma.hbm_to_vmem [thread:$0]  (!%p4191_p8), %s4260_s13, 3072, %s4262_s20, %s496_s28, %s4049_s10, %s4049_s10, %s4050_s29  }
  0x5f   : > { %s3949_s24 = scalar_lea.hbm %s4243_s18, 4096  ;;  %s3954_s16 = scalar_lea.hbm %s4872_s11, 12288 }
  0x60   : > { %p3950_p2 = scmp.ne.s32.totalorder %s4243_s18, %s3949_s24  ;;  %p3955_p13 = scmp.lt.s32.totalorder %s4243_s18, %s4872_s11 }
  0x61   : > { %p3956_p5 = scmp.lt.s32.totalorder %s3954_s16, %s3949_s24 }
  0x62   : > { %p3952_p3 = pnand %p3950_p2, %p4215_p10 }
  0x63   : > { %p3957_p6 = por %p3956_p5, %p3955_p13 }
  0x64   : > { %p3953_p4 = pneg %p3952_p3 }
  0x66   : > { %p3958_p9 = pnand %p3957_p6, %p3953_p4 }
  0x68   : > { %3961 = shalt.err (!%p3958_p9)
}
  0x69   : > { %s3962_s0 = scalar_lea.vmem %s4248_s9, 4096  ;;  %s4051_s13 = smov [#allocation7]  }
  0x6a   : > { %p3963_p11 = scmp.ne.s32.totalorder %s4248_s9, %s3962_s0  ;;  %s3967_s20 = sshll.u32 %s4051_s13, 4  ;;  %s3968_s20 = int_to_ptr.vmem [resolvable:$false] %s3967_s20 }
  0x6b   : > { %s3969_s28 = scalar_lea.vmem %s3968_s20, 8192  ;;  %p3970_p0 = scmp.lt.s32.totalorder %s4248_s9, %s3968_s20 }
  0x6c   : > { %p3965_p7 = pnand %p3963_p11, %p4215_p10  ;;  %p3971_p1 = scmp.lt.s32.totalorder %s3969_s28, %s3962_s0 }
  0x6e   : > { %p3966_p12 = pneg %p3965_p7  ;;  %p3972_p2 = por %p3971_p1, %p3970_p0 }
  0x70   : > { %p3973_p3 = pnand %p3972_p2, %p3966_p12 }
  0x72   : > { %3976 = shalt.err (!%p3973_p3)
}
  0x73   : > { %s4052_s21 = smov 64   ;;  %s4053_s10 = smov 4  }
  0x74   : > { %3605 = dma.hbm_to_vmem [thread:$0]  (!%p4191_p8), %s4243_s18, 4096, %s4248_s9, %s4209_s23, %s4052_s21, %s4052_s21, %s4053_s10  }
  0x75   : > { %p4876_p10 = scmp.ne.s32.totalorder %s4874_s12, 0 }
  0x76   : > { %s608_s14 = sand.u32 (!%p4876_p10), 1, %s4035_s22   ;;  %p4877_p4 = scmp.ne.s32.totalorder (!%p4876_p10), %s4867_s30, 0 }
  0x77   : > { %606 = sbr.rel (%p4876_p10) target bundleno = 2921 (0xb69), region = 80  ;;  %s609_s24 = scalar_lea.sflag (!%p4876_p10), [#allocation3], %s608_s14 }
  0x78   : > { %s3584_s29 = smul.u32 (!%p4876_p10), 192, %s608_s14 }
  0x7a   : > { %s4311_s27 = scalar_lea.vmem (!%p4876_p10), [#allocation2], %s3584_s29 }
  0x7c   : > { %4018 = dma.done.wait (%p4877_p4), %s609_s24, 3072  }
  0x7d   : > { %4020 = vsyncadd (%p4877_p4), %s609_s24, 4294964224  ;;  %s617_s26 = sand.u32 1, %s4167_s25   ;;  %s3213_s17 = sshll.u32 %s608_s14, 8 }
  0x7e   : > { %s618_s9 = scalar_lea.sflag [#allocation6], %s617_s26  ;;  %s4318_s23 = scalar_lea.vmem [#allocation5], %s3213_s17 }
  0x7f   : > { %4022 = dma.done.wait (%p4877_p4), %s618_s9, 8192  }
  0x80   : > { %4024 = vsyncadd (%p4877_p4), %s618_s9, 4294959104  ;;  %p720_p8 = scmp.lt.s32.totalorder %s4167_s25, 2  ;;  %s4878_s5 = sld [smem:[#allocation19_spill]] }
  0x81   : > { %s4879_s4 = sld [smem:[#allocation18_spill]]  ;;  %s4376_s16 = scalar_lea.vmem [#allocation7], %s3213_s17 }
  0x82   : > { %s4326_s12 = scalar_select %p720_p8, %s4167_s25, 2 }
  0x83   : > { %s4881_s24 = sld [smem:[#allocation23_spill]]  ;;  %p3220_p13 = scmp.ne.s32.totalorder %s4167_s25, 0 }
  0x84   : > { %s3585_s13 = smul.u32 3, %s4326_s12  ;;  %s3350_s20 = sshll.u32 %s4326_s12, 6 }
  0x85   : > { %s740_s15 = scalar_lea.vmem %s4833_s7, %s4326_s12  ;;  %s743_s3 = scalar_lea.vmem %s4834_s8, %s4326_s12 }
  0x86   : > { %s4341_s10 = scalar_lea.vmem %s4878_s5, %s3350_s20  ;;  %s3217_s28 = sshll.u32 %s4326_s12, 2 }
  0x87   : > { %s4350_s18 = scalar_lea.vmem %s4879_s4, %s3585_s13  ;;  %s4880_s5 = sld [smem:[#allocation21_spill]] }
  0x88   : > { %s3351_s13 = sshll.u32 %s4326_s12, 5  ;;  %s4882_s22 = sld [smem:[#allocation27_spill]] }
  0x89   : > { %s750_s26 = scalar_lea.vmem %s4881_s24, %s4326_s12  ;;  %s4883_s20 = sld [smem:[#allocation16_spill]] (!%p3220_p13) }
  0x8a   : > { %760 = sbr.rel (%p3220_p13) target bundleno = 145 (0x91), region = 96 }
  0x8d   : > { %s4364_s11 = scalar_lea.vmem %s4880_s5, %s3217_s28 }
  0x8e   : > { %s4374_s30 = scalar_lea.vmem %s4882_s22, %s3351_s13 }
  0x8f   : > { %v761_v0 = vld [vmem:[%s4883_s20] sm:$0xff]  ;;  %v762_v1 = vld [vmem:[%s4883_s20 + $0x8] sm:$0xff] }
  0x90   : > { %763 = vst [vmem:[#allocation8] sm:$0xff] %v761_v0  ;;  %764 = vst [vmem:[#allocation8 + $0x8] sm:$0xff] %v762_v1 }
  0x91 PF: > { %v3711_v4 = vld [vmem:[%s4311_s27 + $0xac] ss:$12 sps:$4 sm:$0xff]   ;;  %v3713_v5 = vld [vmem:[%s4311_s27 + $0xa8] ss:$12 sps:$4 sm:$0xff]   ;;  %v4054_v6 = vmov 0.0   ;;  %v4055_v29 = vmov 0   ;;  %s4885_s21 = scalar_lea.vmem %s4828_s2, %s4326_s12  ;;  %v843_v55 = vlaneseq  ;;  %s4888_s9 = scalar_lea.vmem %s4832_s6, %s4326_s12 }
  0x92   : > { %3446 = vmatprep.subr.bf16.mxu1 %v4054_v6  ;;  %v3714_v7 = vld [vmem:[%s4311_s27 + $0xb0] ss:$12 sps:$4 sm:$0xff]   ;;  %986 = vmatprep.subr.bf16.mxu0 %v3711_v4  ;;  %v3715_v16 = vld [vmem:[%s4311_s27 + $0x94] ss:$12 sps:$4 sm:$0xff]   ;;  %v3718_v18 = vld [vmem:[%s4311_s27 + $0x98] ss:$12 sps:$4 sm:$0xff]  }
  0x93   : > { %987 = vmatpush1.bf16.msra.mxu0 %v3713_v5  ;;  %3447 = vmatpush3.bf16.msra.mxu1 %v3714_v7  ;;  %v3717_v17 = vld [vmem:[%s4311_s27 + $0x90] ss:$12 sps:$4 sm:$0xff]   ;;  %v3721_v20 = vld [vmem:[%s4311_s27 + $0x78] ss:$12 sps:$4 sm:$0xff]   ;;  %v3722_v21 = vld [vmem:[%s4311_s27 + $0x80] ss:$12 sps:$4 sm:$0xff]  }
  0x94   : > { %3448 = vmatprep.subr.bf16.mxu1 %v4054_v6  ;;  %988 = vmatprep.subr.bf16.mxu0 %v3715_v16  ;;  %v3719_v19 = vld [vmem:[%s4311_s27 + $0x7c] ss:$12 sps:$4 sm:$0xff]   ;;  %v3723_v22 = vld [vmem:[%s4311_s27 + $0x64] ss:$12 sps:$4 sm:$0xff]   ;;  %v3725_v23 = vld [vmem:[%s4311_s27 + $0x60] ss:$12 sps:$4 sm:$0xff]  }
  0x95   : > { %v3726_v24 = vld [vmem:[%s4311_s27 + $0x68] ss:$12 sps:$4 sm:$0xff]   ;;  %v3727_v25 = vld [vmem:[%s4311_s27 + $0x4c] ss:$12 sps:$4 sm:$0xff]   ;;  %v3730_v27 = vld [vmem:[%s4311_s27 + $0x50] ss:$12 sps:$4 sm:$0xff]   ;;  %1018 = vmatprep.mubr.bf16.mxu0 %v4055_v29 }
  0x96   : > { %v3729_v26 = vld [vmem:[%s4311_s27 + $0x48] ss:$12 sps:$4 sm:$0xff]   ;;  %vm4056_vm0 = vmmov 0   ;;  %v3733_v30 = vld [vmem:[%s4311_s27 + $0x30] ss:$12 sps:$4 sm:$0xff]   ;;  %v4447_v56 = vshrl.u32 %v843_v55, 7 }
  0x97   : > { %v765_v2 = vld [vmem:[#allocation8] sm:$0xff]  ;;  %v766_v3 = vld [vmem:[#allocation8 + $0x8] sm:$0xff]  ;;  %989 = vmatpush1.bf16.msra.mxu0 %v3717_v17  ;;  %3449 = vmatpush3.bf16.msra.mxu1 %v3718_v18  ;;  %vm1151_vm1 = vcmask 261120   ;;  %s4058_s14 = smov 64   ;;  %s4059_s29 = smov 32   ;;  %vm1651_vm2 = vcmask 1043456  }
  0x98   : > { %769 = vadd.xlane.f32.xlu0 %v765_v2  ;;  %3450 = vmatprep.subr.bf16.mxu1 %v4054_v6  ;;  %v3731_v28 = vld [vmem:[%s4311_s27 + $0x34] ss:$12 sps:$4 sm:$0xff]   ;;  %v3734_v31 = vld [vmem:[%s4311_s27 + $0x38] ss:$12 sps:$4 sm:$0xff]   ;;  %v3735_v32 = vld [vmem:[%s4311_s27 + $0x1c] ss:$12 sps:$4 sm:$0xff]  }
  0x99   : > { %990 = vmatprep.subr.bf16.mxu0 %v3719_v19  ;;  %3462 = vmatprep.mubr.msk.bf16.mxu1 %vm4056_vm0, %v4054_v6  ;;  %v3737_v33 = vld [vmem:[%s4311_s27 + $0x18] ss:$12 sps:$4 sm:$0xff]   ;;  %v3738_v34 = vld [vmem:[%s4311_s27 + $0x20] ss:$12 sps:$4 sm:$0xff]   ;;  %v3742_v37 = vld [vmem:[%s4311_s27 + $0x8] ss:$12 sps:$4 sm:$0xff]  }
  0x9a   : > { %v3739_v35 = vld [vmem:[%s4311_s27 + $0x4] ss:$12 sps:$4 sm:$0xff]   ;;  %v3741_v36 = vld [vmem:[%s4311_s27] ss:$12 sps:$4 sm:$0xff]   ;;  %s4884_s27 = scalar_lea.vmem %s4827_s1, %s4326_s12  ;;  %v853_v57 = vsub.s32 2, %v4447_v56  ;;  %v849_v59 = vsub.s32 1, %v4447_v56 }
  0x9b   : > { %991 = vmatpush1.bf16.msra.mxu0 %v3721_v20  ;;  %3451 = vmatpush3.bf16.msra.mxu1 %v3722_v21  ;;  %v3221_v46 = vld [vmem:[%s4884_s27] ss:$0 sm:$0xff]  ;;  %v845_v60 = vsub.s32 0, %v4447_v56  ;;  %vm1543_vm4 = vcmask 64512   ;;  %vm2043_vm5 = vcmask 523264   ;;  %vm2046_vm6 = vcmask 785408  }
  0x9c   : > { %771 = vadd.xlane.f32.xlu0 %v766_v3  ;;  %3452 = vmatprep.subr.bf16.mxu1 %v4054_v6  ;;  %v3222_v50 = vld [vmem:[%s4885_s21] ss:$0 sm:$0xff]  ;;  %p3341_p5 = scmp.ne.s32.totalorder %s4167_s25, 2 }
  0x9d   : > { %992 = vmatprep.subr.bf16.mxu0 %v3723_v22  ;;  %v841_v58 = vld [vmem:[%s4350_s18] sm:$0x7]  ;;  %s4057_s18 = smov 96   ;;  %s4891_s4 = sld [smem:[#allocation25_spill]] (!%p3341_p5) }
  0x9e   : > { %v854_v61 = vrot.slane %v841_v58, %v853_v57  ;;  %v850_v62 = vrot.slane %v841_v58, %v849_v59  ;;  %v846_v1 = vrot.slane %v841_v58, %v845_v60 }
  0x9f   : > { %993 = vmatpush1.bf16.msra.mxu0 %v3725_v23  ;;  %3453 = vmatpush3.bf16.msra.mxu1 %v3726_v24 }
  0xa0   : > { %994 = vmatprep.subr.bf16.mxu0 %v3727_v25  ;;  %3454 = vmatprep.subr.bf16.mxu1 %v4054_v6 }
  0xa3   : > { %995 = vmatpush1.bf16.msra.mxu0 %v3729_v26  ;;  %3455 = vmatpush3.bf16.msra.mxu1 %v3730_v27 }
  0xa4   : > { %996 = vmatprep.subr.bf16.mxu0 %v3731_v28  ;;  %3456 = vmatprep.subr.bf16.mxu1 %v4054_v6 }
  0xa7   : > { %997 = vmatpush1.bf16.msra.mxu0 %v3733_v30  ;;  %3457 = vmatpush3.bf16.msra.mxu1 %v3734_v31 }
  0xa8   : > { %998 = vmatprep.subr.bf16.mxu0 %v3735_v32  ;;  %3458 = vmatprep.subr.bf16.mxu1 %v4054_v6 }
  0xab   : > { %999 = vmatpush1.bf16.msra.mxu0 %v3737_v33  ;;  %3459 = vmatpush3.bf16.msra.mxu1 %v3738_v34 }
  0xac   : > { %1000 = vmatprep.subr.bf16.mxu0 %v3739_v35  ;;  %3460 = vmatprep.subr.bf16.mxu1 %v4054_v6 }
  0xaf   : > { %1001 = vmatpush1.bf16.msra.mxu0 %v3741_v36  ;;  %3461 = vmatpush3.bf16.msra.mxu1 %v3742_v37 }
  0xb0   : > { %3466 = vmatprep.subr.bf16.mxu1 %v4054_v6  ;;  %3490 = vmatprep.subr.bf16.mxu0 %v4054_v6 }
 0x121   : > { %v770_v8 = vpop.xlane.xlu0 %769 }
 0x122   : > { %v774_v9 = vmul.f32 0.0078125, %v770_v8 }
 0x124   : > { %v4390_v10 = vsub.f32 %v765_v2, %v774_v9 }
 0x125   : > { %v772_v11 = vpop.xlane.xlu0 %771 }
 0x126   : > { %v775_v12 = vmul.f32 0.0078125, %v772_v11  ;;  %v778_v13 = vmul.f32 %v4390_v10, %v4390_v10 }
 0x128   : > { %v4394_v14 = vsub.f32 %v766_v3, %v775_v12  ;;  %780 = vadd.xlane.f32.xlu1 %v778_v13 }
 0x12a   : > { %v779_v15 = vmul.f32 %v4394_v14, %v4394_v14 }
 0x12c   : > { %782 = vadd.xlane.f32.xlu1 %v779_v15 }
 0x1b1   : > { %v781_v38 = vpop.xlane.xlu1 %780 }
 0x1b2   : > { %v784_v39 = vmul.f32 0.0078125, %v781_v38 }
 0x1b4   : > { %v786_v40 = vadd.f32 1e-05, %v784_v39 }
 0x1b5   : > { %v783_v41 = vpop.xlane.xlu1 %782 }
 0x1b6   : > { %3831 = vrsqrt.f32 %v786_v40  ;;  %v785_v42 = vmul.f32 0.0078125, %v783_v41 }
 0x1b8   : > { %v787_v43 = vadd.f32 1e-05, %v785_v42 }
 0x1ba   : > { %3833 = vrsqrt.f32 %v787_v43 }
 0x1c3   : > { %v3832_v44 = vpop.eup %3831 }
 0x1c4   : > { %v790_v45 = vmul.f32 %v3832_v44, %v4390_v10 }
 0x1c6   : > { %v798_v49 = vmul.f32 %v3221_v46, %v790_v45 }
 0x1c7   : > { %v3834_v47 = vpop.eup %3833 }
 0x1c8   : > { %v791_v48 = vmul.f32 %v3834_v47, %v4394_v14  ;;  %v806_v52 = vadd.f32 %v3222_v50, %v798_v49 }
 0x1ca   : > { %v799_v51 = vmul.f32 %v3221_v46, %v791_v48 }
 0x1cc   : > { %v807_v53 = vadd.f32 %v3222_v50, %v799_v51 }
 0x1ce   : > { %v808_v54 = vpack.c.bf16 %v807_v53, %v806_v52 }
 0x1d0   : > { %1019 = vmatmul.mubr.bf16.vlgmr.msra.gmra.mxu0 %v808_v54  ;;  %3463 = vmatmul.mubr.bf16.vlgmr.msra.gmra.mxu1 %v808_v54 }
 0x1d1   : > { %3468 = vmatprep.mubr.msk.bf16.mxu1 %vm4056_vm0, %v4054_v6  ;;  %3492 = vmatprep.mubr.msk.bf16.mxu0 %vm4056_vm0, %v4054_v6 }
 0x290   : > { %v1020_v63 = vpop.f32.mrf.mxu0  ;;  %v1063_v0 = vpop.f32.mrf.mxu1 }
 0x291   : > { %v4459_v2 = vadd.f32 %v1063_v0, %v854_v61  ;;  %v1021_v9 = vadd.f32 %v1020_v63, %v846_v1 }
 0x292   : > { %v1022_v3 = vpop.f32.mrf.mxu0  ;;  %v3464_v4 = vpop.f32.mrf.mxu1 }
 0x293   : > { %3247 = vst [vmem:[%s4374_s30 + $0x10] sm:$0xff] %v4459_v2  ;;  %v1023_v5 = vadd.f32 %v1022_v3, %v850_v62  ;;  %v1135_v21 = vpack.c.bf16 %v1021_v9, %v1021_v9  ;;  %v1640_v0 = vpack.c.bf16 %v4459_v2, %v4459_v2 }
 0x294   : > { %v1024_v7 = vpop.f32.mrf.mxu0  ;;  %v1066_v8 = vpop.f32.mrf.mxu1 }
 0x295   : > { %1070 = vst [vmem:[%s4374_s30] sm:$0xff] %v1023_v5  ;;  %v1025_v10 = vadd.f32 %v1024_v7, %v846_v1  ;;  %v4464_v11 = vadd.f32 %v1066_v8, %v854_v61  ;;  %1097 = vrot.lane.b32.xlu0 %v1023_v5, %s4057_s18  ;;  %v1143_v12 = vpack.c.bf16 %v1023_v5, %v1023_v5 }
 0x296   : > { %v1026_v13 = vpop.f32.mrf.mxu0  ;;  %v3465_v14 = vpop.f32.mrf.mxu1 }
 0x297   : > { %3248 = vst [vmem:[%s4374_s30 + $0x18] sm:$0xff] %v4464_v11  ;;  %v1027_v15 = vadd.f32 %v1026_v13, %v850_v62  ;;  %v1156_v16 = vsel %vm1151_vm1, %v1143_v12, 0  ;;  %v3666_v17 = vpack.i.bf16 %v1025_v10, %v1021_v9  ;;  %v4472_v18 = vpack.i.bf16 %v4464_v11, %v4459_v2 }
 0x298   : > { %3467 = vmatpush3.bf16.xpose.msra.mxu1 %v1156_v16  ;;  %v1136_v24 = vpack.c.bf16 %v1025_v10, %v1025_v10  ;;  %v1641_v1 = vpack.c.bf16 %v4464_v11, %v4464_v11  ;;  %v1531_v2 = vand.u32 127, %v843_v55 }
 0x299   : > { %1071 = vst [vmem:[%s4374_s30 + $0x8] sm:$0xff] %v1027_v15  ;;  %3667 = vrot.lane.b32.xlu0 %v3666_v17, %s4058_s14  ;;  %v3656_v19 = vpack.i.bf16 %v1027_v15, %v1021_v9  ;;  %3472 = vmatprep.subr.bf16.mxu1 %v4054_v6  ;;  %v1144_v20 = vpack.c.bf16 %v1027_v15, %v1027_v15 }
 0x29a   : > { %v3661_v23 = vpack.i.bf16 %v1027_v15, %v1023_v5  ;;  %v1653_v5 = vsel %vm1651_vm2, %v1640_v0, 0  ;;  %v1699_v7 = vsel %vm1651_vm2, %v1641_v1, 0  ;;  %vm4530_vm3 = vcmp.ge.s32.totalorder %v4447_v56, %v1531_v2 }
 0x29b   : > { %3657 = vrot.lane.b32.xlu1 %v3656_v19, %s4057_s18  ;;  %v1202_v22 = vsel %vm1151_vm1, %v1144_v20, 0 }
 0x29d   : > { %3677 = vrot.lane.b32.xlu0 %v3666_v17, %s4059_s29 }
 0x29f   : > { %1079 = vrot.lane.b32.xlu1 %v1025_v10, %s4057_s18  ;;  %3469 = vmatmul.mubr.msk.bf16.vlgmr.msra.gmra.mxu1 %vm1151_vm1, %v1135_v21 }
 0x2a0   : > { %3473 = vmatpush3.bf16.xpose.msra.mxu1 %v1202_v22  ;;  %3474 = vmatprep.mubr.msk.bf16.mxu1 %vm4056_vm0, %v4054_v6 }
 0x2a1   : > { %3478 = vmatprep.subr.bf16.mxu1 %v4054_v6 }
 0x2a3   : > { %3662 = vrot.lane.b32.xlu1 %v3661_v23, %s4058_s14 }
 0x2a7   : > { %3672 = vrot.lane.b32.xlu1 %v3661_v23, %s4059_s29  ;;  %3475 = vmatmul.mubr.msk.bf16.vlgmr.msra.gmra.mxu1 %vm1151_vm1, %v1136_v24 }
 0x2a8   : > { %3480 = vmatprep.mubr.msk.bf16.mxu1 %vm4056_vm0, %v4054_v6 }
 0x307   : > { %v1098_v25 = vpop.permute.xlu0 %1097 }
 0x308   : > { %v1145_v26 = vpack.c.bf16 %v1098_v25, %v1098_v25 }
 0x30a   : > { %v1248_v27 = vsel %vm1151_vm1, %v1145_v26, 0 }
 0x30b   : > { %3479 = vmatpush3.bf16.xpose.msra.mxu1 %v1248_v27  ;;  %v3668_v42 = vpop.permute.xlu0 %3667 }
 0x30c   : > { %3484 = vmatprep.subr.bf16.mxu1 %v4054_v6  ;;  %v3670_v48 = vunpack.i.h.bf16 %v3668_v42  ;;  %v3669_v49 = vunpack.i.l.bf16 %v3668_v42 }
 0x30d   : > { %v3658_v28 = vpop.permute.xlu1 %3657 }
 0x30e   : > { %v3660_v30 = vunpack.i.h.bf16 %v3658_v28  ;;  %v3659_v31 = vunpack.i.l.bf16 %v3658_v28  ;;  %v1140_v52 = vpack.c.bf16 %v3670_v48, %v3670_v48  ;;  %v1139_v53 = vpack.c.bf16 %v3669_v49, %v3669_v49 }
 0x30f   : > { %v3678_v54 = vpop.permute.xlu0 %3677 }
 0x310   : > { %v1146_v32 = vpack.c.bf16 %v3660_v30, %v3660_v30  ;;  %v1137_v33 = vpack.c.bf16 %v3659_v31, %v3659_v31  ;;  %v3680_v62 = vunpack.i.h.bf16 %v3678_v54  ;;  %v3679_v63 = vunpack.i.l.bf16 %v3678_v54 }
 0x311   : > { %v1080_v34 = vpop.permute.xlu1 %1079 }
 0x312   : > { %3481 = vmatmul.mubr.msk.bf16.vlgmr.msra.gmra.mxu1 %vm1151_vm1, %v1137_v33  ;;  %v1294_v35 = vsel %vm1151_vm1, %v1146_v32, 0  ;;  %v1138_v39 = vpack.c.bf16 %v1080_v34, %v1080_v34  ;;  %v1142_v3 = vpack.c.bf16 %v3680_v62, %v3680_v62  ;;  %v1141_v4 = vpack.c.bf16 %v3679_v63, %v3679_v63 }
 0x313   : > { %3485 = vmatpush3.bf16.xpose.msra.mxu1 %v1294_v35  ;;  %3486 = vmatprep.mubr.msk.bf16.mxu1 %vm4056_vm0, %v4054_v6 }
 0x314   : > { %3496 = vmatprep.subr.bf16.mxu1 %v4054_v6 }
 0x315   : > { %v3663_v36 = vpop.permute.xlu1 %3662 }
 0x316   : > { %v3665_v37 = vunpack.i.h.bf16 %v3663_v36  ;;  %v3664_v38 = vunpack.i.l.bf16 %v3663_v36 }
 0x318   : > { %v1148_v40 = vpack.c.bf16 %v3665_v37, %v3665_v37  ;;  %v1147_v41 = vpack.c.bf16 %v3664_v38, %v3664_v38 }
 0x319   : > { %v3673_v43 = vpop.permute.xlu1 %3672 }
 0x31a   : > { %v3675_v44 = vunpack.i.h.bf16 %v3673_v43  ;;  %v3674_v45 = vunpack.i.l.bf16 %v3673_v43  ;;  %3487 = vmatmul.mubr.msk.bf16.vlgmr.msra.gmra.mxu1 %vm1151_vm1, %v1138_v39  ;;  %v1340_v46 = vsel %vm1151_vm1, %v1147_v41, 0  ;;  %v1386_v47 = vsel %vm1151_vm1, %v1148_v40, 0 }
 0x31b   : > { %3491 = vmatpush3.bf16.xpose.msra.mxu0 %v1340_v46  ;;  %3497 = vmatpush3.bf16.xpose.msra.mxu1 %v1386_v47 }
 0x31c   : > { %3498 = vmatprep.mubr.msk.bf16.mxu1 %vm4056_vm0, %v4054_v6  ;;  %3502 = vmatprep.subr.bf16.mxu0 %v4054_v6  ;;  %v1150_v50 = vpack.c.bf16 %v3675_v44, %v3675_v44  ;;  %v1149_v51 = vpack.c.bf16 %v3674_v45, %v3674_v45 }
 0x31d   : > { %3508 = vmatprep.subr.bf16.mxu1 %v4054_v6 }
 0x31e   : > { %v1432_v58 = vsel %vm1151_vm1, %v1149_v51, 0  ;;  %v1478_v61 = vsel %vm1151_vm1, %v1150_v50, 0 }
 0x322   : > { %3493 = vmatmul.mubr.msk.bf16.vlgmr.msra.gmra.mxu0 %vm1151_vm1, %v1139_v53  ;;  %3499 = vmatmul.mubr.msk.bf16.vlgmr.msra.gmra.mxu1 %vm1151_vm1, %v1140_v52 }
 0x323   : > { %3503 = vmatpush3.bf16.xpose.msra.mxu0 %v1432_v58  ;;  %3509 = vmatpush3.bf16.xpose.msra.mxu1 %v1478_v61 }
 0x324   : > { %3504 = vmatprep.mubr.msk.bf16.mxu0 %vm4056_vm0, %v4054_v6  ;;  %3510 = vmatprep.mubr.msk.bf16.mxu1 %vm4056_vm0, %v4054_v6 }
 0x325   : > { %3514 = vmatprep.subr.bf16.mxu0 %v4054_v6  ;;  %3520 = vmatprep.subr.bf16.mxu1 %v4054_v6 }
 0x32a   : > { %3505 = vmatmul.mubr.msk.bf16.vlgmr.msra.gmra.mxu0 %vm1151_vm1, %v1141_v4  ;;  %3511 = vmatmul.mubr.msk.bf16.vlgmr.msra.gmra.mxu1 %vm1151_vm1, %v1142_v3 }
 0x32b   : > { %3515 = vmatpush3.bf16.msra.mxu0 %v1653_v5  ;;  %3521 = vmatpush3.bf16.msra.mxu1 %v1699_v7 }
 0x32c   : > { %3522 = vmatprep.mubr.msk.bf16.mxu1 %vm4056_vm0, %v4054_v6  ;;  %3532 = vmatprep.subr.bf16.mxu1 %v4054_v6 }
 0x32d   : > { %3516 = vmatprep.mubr.msk.bf16.mxu0 %vm4056_vm0, %v4054_v6  ;;  %3526 = vmatprep.subr.bf16.mxu0 %v4054_v6 }
 0x35f   : > { %v1192_v8 = vpop.f32.mrf.mxu1 }
 0x360   : > { %v1520_v10 = vmul.f32 0.17677669, %v1192_v8 }
 0x361   : > { %v3470_v11 = vpop.f32.mrf.mxu1 }
 0x362   : > { %v4536_v12 = vsel %vm4530_vm3, %v1520_v10, -1e+10 }
 0x363   : > { %v1195_v13 = vpop.f32.mrf.mxu1  ;;  %v1544_v14 = vsel %vm1543_vm4, %v4536_v12, -inf }
 0x364   : > { %1545 = vmax.xlane.f32.xlu1 %v1544_v14 }
 0x365   : > { %v3471_v15 = vpop.f32.mrf.mxu1 }
 0x367   : > { %v1238_v55 = vpop.f32.mrf.mxu1 }
 0x368   : > { %v1521_v16 = vmul.f32 0.17677669, %v1238_v55 }
 0x369   : > { %v3476_v17 = vpop.f32.mrf.mxu1 }
 0x36a   : > { %v1536_v19 = vsel %vm4530_vm3, %v1521_v16, -1e+10 }
 0x36b   : > { %v1241_v20 = vpop.f32.mrf.mxu1  ;;  %v1547_v21 = vsel %vm1543_vm4, %v1536_v19, -inf }
 0x36c   : > { %1548 = vmax.xlane.f32.xlu0 %v1547_v21 }
 0x36d   : > { %v3477_v22 = vpop.f32.mrf.mxu1 }
 0x3d2   : > { %v1284_v23 = vpop.f32.mrf.mxu1 }
 0x3d3   : > { %v1522_v24 = vmul.f32 0.17677669, %v1284_v23 }
 0x3d4   : > { %v3482_v25 = vpop.f32.mrf.mxu1 }
 0x3d5   : > { %v1537_v26 = vsel %vm4530_vm3, %v1522_v24, -1e+10 }
 0x3d6   : > { %v1287_v27 = vpop.f32.mrf.mxu1  ;;  %v1550_v28 = vsel %vm1543_vm4, %v1537_v26, -inf }
 0x3d7   : > { %1551 = vmax.xlane.f32.xlu0 %v1550_v28 }
 0x3d8   : > { %v3483_v30 = vpop.f32.mrf.mxu1 }
 0x3da   : > { %v1330_v31 = vpop.f32.mrf.mxu1 }
 0x3db   : > { %v1523_v32 = vmul.f32 0.17677669, %v1330_v31 }
 0x3dc   : > { %v3488_v33 = vpop.f32.mrf.mxu1 }
 0x3dd   : > { %v1538_v34 = vsel %vm4530_vm3, %v1523_v32, -1e+10 }
 0x3de   : > { %v1333_v35 = vpop.f32.mrf.mxu1  ;;  %v1553_v36 = vsel %vm1543_vm4, %v1538_v34, -inf }
 0x3df   : > { %1554 = vmax.xlane.f32.xlu0 %v1553_v36 }
 0x3e0   : > { %v3489_v37 = vpop.f32.mrf.mxu1 }
 0x3e2   : > { %v1376_v38 = vpop.f32.mrf.mxu0  ;;  %v1422_v39 = vpop.f32.mrf.mxu1 }
 0x3e3   : > { %v1524_v40 = vmul.f32 0.17677669, %v1376_v38  ;;  %v1525_v41 = vmul.f32 0.17677669, %v1422_v39 }
 0x3e4   : > { %v3494_v42 = vpop.f32.mrf.mxu0  ;;  %v3500_v43 = vpop.f32.mrf.mxu1 }
 0x3e5   : > { %v1539_v44 = vsel %vm4530_vm3, %v1524_v40, -1e+10  ;;  %v1540_v45 = vsel %vm4530_vm3, %v1525_v41, -1e+10 }
 0x3e6   : > { %v1379_v46 = vpop.f32.mrf.mxu0  ;;  %v1425_v47 = vpop.f32.mrf.mxu1  ;;  %v1556_v48 = vsel %vm1543_vm4, %v1539_v44, -inf  ;;  %v1559_v49 = vsel %vm1543_vm4, %v1540_v45, -inf }
 0x3e7   : > { %1557 = vmax.xlane.f32.xlu1 %v1556_v48  ;;  %1560 = vmax.xlane.f32.xlu0 %v1559_v49 }
 0x3e8   : > { %v3495_v50 = vpop.f32.mrf.mxu0  ;;  %v3501_v51 = vpop.f32.mrf.mxu1 }
 0x3ea   : > { %v1468_v52 = vpop.f32.mrf.mxu0  ;;  %v1514_v53 = vpop.f32.mrf.mxu1 }
 0x3eb   : > { %v1526_v54 = vmul.f32 0.17677669, %v1468_v52  ;;  %v1527_v58 = vmul.f32 0.17677669, %v1514_v53 }
 0x3ec   : > { %v3506_v61 = vpop.f32.mrf.mxu0  ;;  %v3512_v62 = vpop.f32.mrf.mxu1 }
 0x3ed   : > { %v1541_v63 = vsel %vm4530_vm3, %v1526_v54, -1e+10  ;;  %v1542_v0 = vsel %vm4530_vm3, %v1527_v58, -1e+10  ;;  %v1546_v9 = vpop.xlane.xlu1 %1545 }
 0x3ee   : > { %v1471_v1 = vpop.f32.mrf.mxu0  ;;  %v1517_v3 = vpop.f32.mrf.mxu1  ;;  %v1562_v4 = vsel %vm1543_vm4, %v1541_v63, -inf  ;;  %v1565_v5 = vsel %vm1543_vm4, %v1542_v0, -inf  ;;  %v1568_v15 = vsub.f32 %v4536_v12, %v1546_v9 }
 0x3ef   : > { %1563 = vmax.xlane.f32.xlu1 %v1562_v4  ;;  %1566 = vmax.xlane.f32.xlu0 %v1565_v5 }
 0x3f0   : > { %v3507_v7 = vpop.f32.mrf.mxu0  ;;  %v3513_v2 = vpop.f32.mrf.mxu1  ;;  %v1576_v55 = vmul.f32 1.442695, %v1568_v15 }
 0x3f5   : > { %v1549_v8 = vpop.xlane.xlu0 %1548 }
 0x3f6   : > { %v1569_v10 = vsub.f32 %v1536_v19, %v1549_v8 }
 0x3f8   : > { %v1578_v11 = vmul.f32 1.442695, %v1569_v10 }
 0x3fa   : > { %3835 = vpow2.f32 %v1578_v11 }
 0x3fb   : > { %3837 = vpow2.f32 %v1576_v55 }
 0x400   : > { %3682 = vrot.lane.b32.xlu1 %v4472_v18, %s4057_s18 }
 0x407   : > { %v3836_v13 = vpop.eup %3835 }
 0x408   : > { %v1595_v14 = vsel %vm1543_vm4, %v3836_v13, 0.0  ;;  %v4565_v16 = vpop.eup %3837 }
 0x409   : > { %1596 = vadd.xlane.f32.xlu0 %v1595_v14  ;;  %v1592_v17 = vsel %vm1543_vm4, %v4565_v16, 0.0 }
 0x424   : > { %1593 = vadd.xlane.f32.xlu1 %v1592_v17 }
 0x460   : > { %v1552_v19 = vpop.xlane.xlu0 %1551 }
 0x461   : > { %v1570_v20 = vsub.f32 %v1537_v26, %v1552_v19 }
 0x463   : > { %v1580_v21 = vmul.f32 1.442695, %v1570_v20 }
 0x465   : > { %3839 = vpow2.f32 %v1580_v21 }
 0x468   : > { %v1555_v22 = vpop.xlane.xlu0 %1554 }
 0x469   : > { %v1571_v23 = vsub.f32 %v1538_v34, %v1555_v22 }
 0x46b   : > { %v1582_v24 = vmul.f32 1.442695, %v1571_v23 }
 0x46d   : > { %3841 = vpow2.f32 %v1582_v24 }
 0x470   : > { %v1558_v25 = vpop.xlane.xlu1 %1557  ;;  %v1561_v27 = vpop.xlane.xlu0 %1560 }
 0x471   : > { %v1572_v28 = vsub.f32 %v1539_v44, %v1558_v25  ;;  %v1573_v12 = vsub.f32 %v1540_v45, %v1561_v27 }
 0x472   : > { %v3840_v30 = vpop.eup %3839 }
 0x473   : > { %v1584_v31 = vmul.f32 1.442695, %v1572_v28  ;;  %v1586_v32 = vmul.f32 1.442695, %v1573_v12  ;;  %v1598_v33 = vsel %vm1543_vm4, %v3840_v30, 0.0 }
 0x474   : > { %1599 = vadd.xlane.f32.xlu1 %v1598_v33 }
 0x475   : > { %3843 = vpow2.f32 %v1584_v31 }
 0x476   : > { %3845 = vpow2.f32 %v1586_v32 }
 0x478   : > { %v1564_v35 = vpop.xlane.xlu1 %1563  ;;  %v1567_v26 = vpop.xlane.xlu0 %1566 }
 0x479   : > { %v1574_v36 = vsub.f32 %v1541_v63, %v1564_v35  ;;  %v1575_v37 = vsub.f32 %v1542_v0, %v1567_v26 }
 0x47a   : > { %v3842_v38 = vpop.eup %3841 }
 0x47b   : > { %v1588_v34 = vmul.f32 1.442695, %v1574_v36  ;;  %v1590_v39 = vmul.f32 1.442695, %v1575_v37  ;;  %v1601_v40 = vsel %vm1543_vm4, %v3842_v38, 0.0 }
 0x47c   : > { %1602 = vadd.xlane.f32.xlu0 %v1601_v40  ;;  %v3683_v50 = vpop.permute.xlu1 %3682 }
 0x47d   : > { %3847 = vpow2.f32 %v1588_v34  ;;  %v3685_v51 = vunpack.i.h.bf16 %v3683_v50  ;;  %v3684_v63 = vunpack.i.l.bf16 %v3683_v50 }
 0x47e   : > { %3849 = vpow2.f32 %v1590_v39 }
 0x47f   : > { %v1643_v53 = vpack.c.bf16 %v3685_v51, %v3685_v51  ;;  %v1642_v1 = vpack.c.bf16 %v3684_v63, %v3684_v63 }
 0x481   : > { %v1791_v61 = vsel %vm1651_vm2, %v1643_v53, 0 }
 0x482   : > { %v4571_v41 = vpop.eup %3843 }
 0x483   : > { %v4573_v42 = vpop.eup %3845  ;;  %v1604_v43 = vsel %vm1543_vm4, %v4571_v41, 0.0 }
 0x484   : > { %1605 = vadd.xlane.f32.xlu1 %v1604_v43  ;;  %v1607_v44 = vsel %vm1543_vm4, %v4573_v42, 0.0 }
 0x485   : > { %1608 = vadd.xlane.f32.xlu0 %v1607_v44 }
 0x48a   : > { %v4579_v45 = vpop.eup %3847 }
 0x48b   : > { %v4581_v46 = vpop.eup %3849  ;;  %v1610_v47 = vsel %vm1543_vm4, %v4579_v45, 0.0 }
 0x48c   : > { %1611 = vadd.xlane.f32.xlu1 %v1610_v47  ;;  %v1613_v48 = vsel %vm1543_vm4, %v4581_v46, 0.0 }
 0x48d   : > { %1614 = vadd.xlane.f32.xlu0 %v1613_v48  ;;  %v3743_v48 = vld [vmem:[%s4341_s10 + $0x38] sm:$0xff]  }
 0x492   : > { %v1597_v49 = vpop.xlane.xlu0 %1596 }
 0x493   : > { %3851 = vrcp.f32 %v1597_v49  ;;  %v3744_v49 = vld [vmem:[%s4341_s10 + $0x30] sm:$0xff]  }
 0x49d   : > { %3692 = vrot.lane.b32.xlu1 %v4472_v18, %s4059_s29 }
 0x4a0   : > { %v3852_v52 = vpop.eup %3851 }
 0x4a1   : > { %v1625_v54 = vmul.f32 %v3852_v52, %v3836_v13 }
 0x4a3   : > { %3687 = vrot.lane.b32.xlu0 %v4472_v18, %s4058_s14  ;;  %v1633_v58 = vpack.c.bf16 %v1625_v54, %v1625_v54  ;;  %v1745_v18 = vsel %vm1651_vm2, %v1642_v1, 0  ;;  %v3745_v54 = vld [vmem:[%s4341_s10 + $0x28] sm:$0xff]  }
 0x4a5   : > { %3523 = vmatmul.mubr.msk.bf16.vlgmr.msra.gmra.mxu1 %vm1543_vm4, %v1633_v58 }
 0x4a6   : > { %3533 = vmatpush3.bf16.msra.mxu1 %v1791_v61  ;;  %3534 = vmatprep.mubr.msk.bf16.mxu1 %vm4056_vm0, %v4054_v6  ;;  %v3746_v61 = vld [vmem:[%s4341_s10 + $0x20] sm:$0xff]  }
 0x4a7   : > { %3544 = vmatprep.subr.bf16.mxu1 %v4054_v6 }
 0x4ad   : > { %v1594_v62 = vpop.xlane.xlu1 %1593 }
 0x4ae   : > { %3853 = vrcp.f32 %v1594_v62 }
 0x4bb   : > { %v3854_v0 = vpop.eup %3853 }
 0x4bc   : > { %v1624_v3 = vmul.f32 %v3854_v0, %v4565_v16  ;;  %v3747_v0 = vld [vmem:[%s4341_s10 + $0x18] sm:$0xff]  }
 0x4be   : > { %v1632_v4 = vpack.c.bf16 %v1624_v3, %v1624_v3 }
 0x4c0   : > { %3517 = vmatmul.mubr.msk.bf16.vlgmr.msra.gmra.mxu0 %vm1543_vm4, %v1632_v4 }
 0x4c1   : > { %3527 = vmatpush3.bf16.msra.mxu0 %v1745_v18  ;;  %3528 = vmatprep.mubr.msk.bf16.mxu0 %vm4056_vm0, %v4054_v6 }
 0x4c2   : > { %3538 = vmatprep.subr.bf16.mxu0 %v4054_v6 }
 0x4fd   : > { %v1600_v5 = vpop.xlane.xlu1 %1599 }
 0x4fe   : > { %3855 = vrcp.f32 %v1600_v5  ;;  %v3748_v5 = vld [vmem:[%s4341_s10 + $0x10] sm:$0xff]  }
 0x505   : > { %v1603_v7 = vpop.xlane.xlu0 %1602 }
 0x506   : > { %3857 = vrcp.f32 %v1603_v7 }
 0x50b   : > { %v3856_v2 = vpop.eup %3855 }
 0x50c   : > { %v1626_v8 = vmul.f32 %v3856_v2, %v3840_v30  ;;  %v3749_v2 = vld [vmem:[%s4341_s10 + $0x8] sm:$0xff]  }
 0x50d   : > { %v1606_v10 = vpop.xlane.xlu1 %1605 }
 0x50e   : > { %3859 = vrcp.f32 %v1606_v10  ;;  %v1609_v11 = vpop.xlane.xlu0 %1608  ;;  %v1634_v13 = vpack.c.bf16 %v1626_v8, %v1626_v8 }
 0x50f   : > { %3861 = vrcp.f32 %v1609_v11 }
 0x510   : > { %3529 = vmatmul.mubr.msk.bf16.vlgmr.msra.gmra.mxu0 %vm1543_vm4, %v1634_v13  ;;  %v3750_v13 = vld [vmem:[%s4341_s10] sm:$0xff]  }
 0x511   : > { %3540 = vmatprep.mubr.msk.bf16.mxu0 %vm4056_vm0, %v4054_v6 }
 0x513   : > { %v3858_v9 = vpop.eup %3857 }
 0x514   : > { %v1627_v14 = vmul.f32 %v3858_v9, %v3842_v38 }
 0x515   : > { %v1612_v15 = vpop.xlane.xlu1 %1611 }
 0x516   : > { %3863 = vrcp.f32 %v1612_v15  ;;  %v1615_v55 = vpop.xlane.xlu0 %1614  ;;  %v1635_v16 = vpack.c.bf16 %v1627_v14, %v1627_v14 }
 0x517   : > { %3865 = vrcp.f32 %v1615_v55 }
 0x518   : > { %3535 = vmatmul.mubr.msk.bf16.vlgmr.msra.gmra.mxu1 %vm1543_vm4, %v1635_v16 }
 0x519   : > { %v3693_v17 = vpop.permute.xlu1 %3692  ;;  %3546 = vmatprep.mubr.msk.bf16.mxu1 %vm4056_vm0, %v4054_v6 }
 0x51a   : > { %v3688_v19 = vpop.permute.xlu0 %3687  ;;  %v3695_v21 = vunpack.i.h.bf16 %v3693_v17  ;;  %v3694_v22 = vunpack.i.l.bf16 %v3693_v17 }
 0x51b   : > { %v3860_v20 = vpop.eup %3859  ;;  %v3690_v23 = vunpack.i.h.bf16 %v3688_v19  ;;  %v3689_v24 = vunpack.i.l.bf16 %v3688_v19 }
 0x51c   : > { %v3862_v25 = vpop.eup %3861  ;;  %v1628_v12 = vmul.f32 %v3860_v20, %v4571_v41  ;;  %v1647_v31 = vpack.c.bf16 %v3695_v21, %v3695_v21  ;;  %v1646_v32 = vpack.c.bf16 %v3694_v22, %v3694_v22 }
 0x51d   : > { %v1645_v27 = vpack.c.bf16 %v3690_v23, %v3690_v23  ;;  %v1644_v28 = vpack.c.bf16 %v3689_v24, %v3689_v24  ;;  %v1629_v30 = vmul.f32 %v3862_v25, %v4573_v42 }
 0x51e   : > { %v1636_v26 = vpack.c.bf16 %v1628_v12, %v1628_v12  ;;  %v1929_v38 = vsel %vm1651_vm2, %v1646_v32, 0  ;;  %v1975_v34 = vsel %vm1651_vm2, %v1647_v31, 0 }
 0x51f   : > { %v1837_v33 = vsel %vm1651_vm2, %v1644_v28, 0  ;;  %v1883_v35 = vsel %vm1651_vm2, %v1645_v27, 0  ;;  %v1637_v36 = vpack.c.bf16 %v1629_v30, %v1629_v30 }
 0x520   : > { %3539 = vmatpush3.bf16.msra.mxu0 %v1837_v33  ;;  %3545 = vmatpush3.bf16.msra.mxu1 %v1883_v35 }
 0x521   : > { %3550 = vmatprep.subr.bf16.mxu0 %v4054_v6  ;;  %3556 = vmatprep.subr.bf16.mxu1 %v4054_v6 }
 0x523   : > { %v3864_v37 = vpop.eup %3863  ;;  %3541 = vmatmul.mubr.msk.bf16.vlgmr.msra.gmra.mxu0 %vm1543_vm4, %v1636_v26  ;;  %3547 = vmatmul.mubr.msk.bf16.vlgmr.msra.gmra.mxu1 %vm1543_vm4, %v1637_v36 }
 0x524   : > { %v3866_v39 = vpop.eup %3865  ;;  %3551 = vmatpush3.bf16.msra.mxu0 %v1929_v38  ;;  %3557 = vmatpush3.bf16.msra.mxu1 %v1975_v34  ;;  %v1630_v40 = vmul.f32 %v3864_v37, %v4579_v45 }
 0x525   : > { %3552 = vmatprep.mubr.msk.bf16.mxu0 %vm4056_vm0, %v4054_v6  ;;  %3558 = vmatprep.mubr.msk.bf16.mxu1 %vm4056_vm0, %v4054_v6  ;;  %v1631_v41 = vmul.f32 %v3866_v39, %v4581_v46 }
 0x526   : > { %3562 = vmatprep.subr.bf16.mxu0 %v4054_v6  ;;  %v1638_v42 = vpack.c.bf16 %v1630_v40, %v1630_v40 }
 0x527   : > { %v1639_v43 = vpack.c.bf16 %v1631_v41, %v1631_v41 }
 0x52b   : > { %3553 = vmatmul.mubr.msk.bf16.vlgmr.msra.gmra.mxu0 %vm1543_vm4, %v1638_v42  ;;  %3559 = vmatmul.mubr.msk.bf16.vlgmr.msra.gmra.mxu1 %vm1543_vm4, %v1639_v43 }
 0x52c   : > { %3578 = vmatprep.mubr.msk.bf16.mxu0 %vm4056_vm0, %v4054_v6  ;;  %2451 = vmatprep.mubr.bf16.mxu1 %v4055_v29 }
 0x52d   : > { %3563 = vmatpush3.bf16.msra.mxu0 %v3743_v48  ;;  %v3887_v48 = vld [vmem:[#allocation8] sm:$0xff] }
 0x52e   : > { %3564 = vmatprep.subr.bf16.mxu0 %v4054_v6 }
 0x531   : > { %3565 = vmatpush3.bf16.msra.mxu0 %v3744_v49 }
 0x532   : > { %3566 = vmatprep.subr.bf16.mxu0 %v4054_v6 }
 0x535   : > { %3567 = vmatpush3.bf16.msra.mxu0 %v3745_v54  ;;  %v3751_v54 = vld [vmem:[%s4318_s23 + $0xe0] ss:$16 sps:$4 sm:$0xff]  }
 0x536   : > { %3568 = vmatprep.subr.bf16.mxu0 %v4054_v6 }
 0x539   : > { %3569 = vmatpush3.bf16.msra.mxu0 %v3746_v61  ;;  %v3754_v61 = vld [vmem:[%s4318_s23 + $0xe8] ss:$16 sps:$4 sm:$0xff]  }
 0x53a   : > { %3570 = vmatprep.subr.bf16.mxu0 %v4054_v6 }
 0x53d   : > { %3571 = vmatpush3.bf16.msra.mxu0 %v3747_v0 }
 0x53e   : > { %3572 = vmatprep.subr.bf16.mxu0 %v4054_v6 }
 0x541   : > { %3573 = vmatpush3.bf16.msra.mxu0 %v3748_v5 }
 0x542   : > { %3574 = vmatprep.subr.bf16.mxu0 %v4054_v6 }
 0x545   : > { %3575 = vmatpush3.bf16.msra.mxu0 %v3749_v2  ;;  %v3759_v2 = vld [vmem:[%s4318_s23 + $0xc4] ss:$16 sps:$4 sm:$0xff]  }
 0x546   : > { %3576 = vmatprep.subr.bf16.mxu0 %v4054_v6 }
 0x549   : > { %3577 = vmatpush3.bf16.msra.mxu0 %v3750_v13  ;;  %v3765_v13 = vld [vmem:[%s4318_s23 + $0xa4] ss:$16 sps:$4 sm:$0xff]  }
 0x565   : > { %v4630_v44 = vpop.f32.mrf.mxu1 }
 0x567   : > { %v3524_v47 = vpop.f32.mrf.mxu1 }
 0x569   : > { %v1738_v45 = vpop.f32.mrf.mxu1 }
 0x56b   : > { %v3525_v46 = vpop.f32.mrf.mxu1 }
 0x580   : > { %v1689_v50 = vpop.f32.mrf.mxu0 }
 0x582   : > { %v3518_v51 = vpop.f32.mrf.mxu0 }
 0x584   : > { %v1692_v52 = vpop.f32.mrf.mxu0 }
 0x586   : > { %v3519_v53 = vpop.f32.mrf.mxu0 }
 0x587   : > { %v3888_v53 = vld [vmem:[#allocation8 + $0x8] sm:$0xff] }
 0x5d0   : > { %v1781_v58 = vpop.f32.mrf.mxu0 }
 0x5d2   : > { %v3530_v62 = vpop.f32.mrf.mxu0 }
 0x5d3   : > { %v3756_v62 = vld [vmem:[%s4318_s23 + $0xec] ss:$16 sps:$4 sm:$0xff]  }
 0x5d4   : > { %v1784_v63 = vpop.f32.mrf.mxu0  ;;  %2462 = vmatprep.subr.bf16.mxu0 %v3756_v62  ;;  %v3803_v62 = vld [vmem:[%s4376_s16 + $0x70] sm:$0xff]  }
 0x5d6   : > { %v3531_v1 = vpop.f32.mrf.mxu0 }
 0x5d8   : > { %v1827_v3 = vpop.f32.mrf.mxu1 }
 0x5d9   : > { %v3696_v4 = vpack.i.bf16 %v1827_v3, %v1781_v58  ;;  %v3753_v58 = vld [vmem:[%s4318_s23 + $0xe4] ss:$16 sps:$4 sm:$0xff]  }
 0x5da   : > { %v3536_v18 = vpop.f32.mrf.mxu1  ;;  %2419 = vmatprep.subr.bf16.mxu1 %v3753_v58  ;;  %v3801_v58 = vld [vmem:[%s4376_s16 + $0x38] sm:$0xff]  }
 0x5db   : > { %3697 = vrot.lane.b32.xlu1 %v3696_v4, %s4059_s29  ;;  %2420 = vmatpush1.bf16.msra.mxu1 %v3751_v54  ;;  %v3800_v54 = vld [vmem:[%s4376_s16 + $0xf8] sm:$0xff]  }
 0x5dc   : > { %v1830_v7 = vpop.f32.mrf.mxu1  ;;  %2421 = vmatprep.subr.bf16.mxu1 %v3759_v2  ;;  %v3812_v2 = vld [vmem:[%s4376_s16 + $0xe0] sm:$0xff]  }
 0x5de   : > { %v3537_v8 = vpop.f32.mrf.mxu1 }
 0x5df   : > { %v3762_v8 = vld [vmem:[%s4318_s23 + $0xcc] ss:$16 sps:$4 sm:$0xff]  }
 0x5e3   : > { %v1873_v10 = vpop.f32.mrf.mxu0  ;;  %v1919_v11 = vpop.f32.mrf.mxu1 }
 0x5e4   : > { %v3701_v9 = vpack.i.bf16 %v1919_v11, %v1873_v10  ;;  %v3757_v10 = vld [vmem:[%s4318_s23 + $0xc0] ss:$16 sps:$4 sm:$0xff]   ;;  %v3760_v11 = vld [vmem:[%s4318_s23 + $0xc8] ss:$16 sps:$4 sm:$0xff]  }
 0x5e5   : > { %v3542_v14 = vpop.f32.mrf.mxu0  ;;  %v3548_v15 = vpop.f32.mrf.mxu1  ;;  %2422 = vmatpush1.bf16.msra.mxu1 %v3757_v10  ;;  %v3814_v10 = vld [vmem:[%s4376_s16 + $0xa0] sm:$0xff]  }
 0x5e6   : > { %3702 = vrot.lane.b32.xlu1 %v3701_v9, %s4058_s14  ;;  %v3768_v9 = vld [vmem:[%s4318_s23 + $0xac] ss:$16 sps:$4 sm:$0xff]   ;;  %v3763_v14 = vld [vmem:[%s4318_s23 + $0xa0] ss:$16 sps:$4 sm:$0xff]   ;;  %v3766_v15 = vld [vmem:[%s4318_s23 + $0xa8] ss:$16 sps:$4 sm:$0xff]   ;;  %2423 = vmatprep.subr.bf16.mxu1 %v3765_v13 }
 0x5e7   : > { %v1876_v55 = vpop.f32.mrf.mxu0  ;;  %v1922_v16 = vpop.f32.mrf.mxu1  ;;  %v3816_v13 = vld [vmem:[%s4376_s16 + $0xd8] sm:$0xff]  }
 0x5e8   : > { %v3771_v55 = vld [vmem:[%s4318_s23 + $0x84] ss:$16 sps:$4 sm:$0xff]   ;;  %v3769_v16 = vld [vmem:[%s4318_s23 + $0x80] ss:$16 sps:$4 sm:$0xff]  }
 0x5e9   : > { %v3543_v17 = vpop.f32.mrf.mxu0  ;;  %v3549_v19 = vpop.f32.mrf.mxu1  ;;  %2424 = vmatpush1.bf16.msra.mxu1 %v3763_v14  ;;  %v3818_v14 = vld [vmem:[%s4376_s16 + $0x98] sm:$0xff]  }
 0x5ea   : > { %v3772_v17 = vld [vmem:[%s4318_s23 + $0x88] ss:$16 sps:$4 sm:$0xff]   ;;  %v3774_v19 = vld [vmem:[%s4318_s23 + $0x8c] ss:$16 sps:$4 sm:$0xff]   ;;  %2425 = vmatprep.subr.bf16.mxu1 %v3771_v55  ;;  %v3820_v55 = vld [vmem:[%s4376_s16 + $0xd0] sm:$0xff]  }
 0x5eb   : > { %v1965_v20 = vpop.f32.mrf.mxu0  ;;  %v2011_v21 = vpop.f32.mrf.mxu1 }
 0x5ec   : > { %v3706_v22 = vpack.i.bf16 %v2011_v21, %v1965_v20  ;;  %v3777_v20 = vld [vmem:[%s4318_s23 + $0x64] ss:$16 sps:$4 sm:$0xff]   ;;  %v3780_v21 = vld [vmem:[%s4318_s23 + $0x6c] ss:$16 sps:$4 sm:$0xff]  }
 0x5ed   : > { %v3554_v23 = vpop.f32.mrf.mxu0  ;;  %v3560_v24 = vpop.f32.mrf.mxu1  ;;  %2426 = vmatpush1.bf16.msra.mxu1 %v3769_v16  ;;  %v3821_v16 = vld [vmem:[%s4376_s16 + $0x10] sm:$0xff]  }
 0x5ee   : > { %3707 = vrot.lane.b32.xlu0 %v3706_v22, %s4057_s18  ;;  %v3775_v22 = vld [vmem:[%s4318_s23 + $0x60] ss:$16 sps:$4 sm:$0xff]   ;;  %v3778_v23 = vld [vmem:[%s4318_s23 + $0x68] ss:$16 sps:$4 sm:$0xff]   ;;  %2427 = vmatprep.subr.bf16.mxu1 %v3777_v20  ;;  %v3783_v24 = vld [vmem:[%s4318_s23 + $0x44] ss:$16 sps:$4 sm:$0xff]  }
 0x5ef   : > { %v1968_v6 = vpop.f32.mrf.mxu0  ;;  %v2014_v25 = vpop.f32.mrf.mxu1  ;;  %v3824_v20 = vld [vmem:[%s4376_s16 + $0xc8] sm:$0xff]  }
 0x5f0   : > { %v3786_v6 = vld [vmem:[%s4318_s23 + $0x4c] ss:$16 sps:$4 sm:$0xff]   ;;  %v3781_v25 = vld [vmem:[%s4318_s23 + $0x40] ss:$16 sps:$4 sm:$0xff]  }
 0x5f1   : > { %v3555_v27 = vpop.f32.mrf.mxu0  ;;  %v3561_v28 = vpop.f32.mrf.mxu1  ;;  %2428 = vmatpush1.bf16.msra.mxu1 %v3775_v22  ;;  %v3826_v22 = vld [vmem:[%s4376_s16 + $0x88] sm:$0xff]  }
 0x5f2   : > { %v3784_v27 = vld [vmem:[%s4318_s23 + $0x48] ss:$16 sps:$4 sm:$0xff]   ;;  %2429 = vmatprep.subr.bf16.mxu1 %v3783_v24  ;;  %v3789_v28 = vld [vmem:[%s4318_s23 + $0x24] ss:$16 sps:$4 sm:$0xff]  }
 0x5f3   : > { %v3828_v24 = vld [vmem:[%s4376_s16 + $0xc0] sm:$0xff]  }
 0x5f5   : > { %2430 = vmatpush1.bf16.msra.mxu1 %v3781_v25  ;;  %v3830_v25 = vld [vmem:[%s4376_s16 + $0x80] sm:$0xff]  }
 0x5f6   : > { %2431 = vmatprep.subr.bf16.mxu1 %v3789_v28  ;;  %v2253_v28 = vsub.s32 3, %v4447_v56 }
 0x64d   : > { %v3698_v12 = vpop.permute.xlu1 %3697 }
 0x64e   : > { %v3700_v31 = vunpack.i.h.bf16 %v3698_v12  ;;  %v3699_v32 = vunpack.i.l.bf16 %v3698_v12  ;;  %v3792_v12 = vld [vmem:[%s4318_s23 + $0x2c] ss:$16 sps:$4 sm:$0xff]  }
 0x650   : > { %v2042_v36 = vsel %vm1151_vm1, %v4630_v44, %v3700_v31  ;;  %v2041_v37 = vsel %vm1151_vm1, %v1689_v50, %v3699_v32  ;;  %v3265_v44 = vld [vmem:[%s4888_s9] ss:$0 sm:$0xff]  ;;  %v3790_v31 = vld [vmem:[%s4318_s23 + $0x28] ss:$16 sps:$4 sm:$0xff]   ;;  %v3795_v32 = vld [vmem:[%s4318_s23 + $0x4] ss:$16 sps:$4 sm:$0xff]  }
 0x658   : > { %v3703_v30 = vpop.permute.xlu1 %3702 }
 0x659   : > { %v3705_v33 = vunpack.i.h.bf16 %v3703_v30  ;;  %v3704_v35 = vunpack.i.l.bf16 %v3703_v30  ;;  %v3787_v30 = vld [vmem:[%s4318_s23 + $0x20] ss:$16 sps:$4 sm:$0xff]  }
 0x65a   : > { %2432 = vmatpush1.bf16.msra.mxu1 %v3787_v30 }
 0x65b   : > { %v2045_v39 = vsel %vm2043_vm5, %v2042_v36, %v3705_v33  ;;  %v2044_v40 = vsel %vm2043_vm5, %v2041_v37, %v3704_v35  ;;  %v3798_v33 = vld [vmem:[%s4318_s23 + $0xc] ss:$16 sps:$4 sm:$0xff]   ;;  %v3793_v35 = vld [vmem:[%s4318_s23] ss:$16 sps:$4 sm:$0xff]   ;;  %2433 = vmatprep.subr.bf16.mxu1 %v3795_v32 }
 0x65e   : > { %2434 = vmatpush1.bf16.msra.mxu1 %v3793_v35 }
 0x660   : > { %v3708_v26 = vpop.permute.xlu0 %3707 }
 0x661   : > { %v3710_v38 = vunpack.i.h.bf16 %v3708_v26  ;;  %v3709_v34 = vunpack.i.l.bf16 %v3708_v26  ;;  %v3796_v26 = vld [vmem:[%s4318_s23 + $0x8] ss:$16 sps:$4 sm:$0xff]  }
 0x663   : > { %v2048_v41 = vsel %vm2046_vm6, %v2045_v39, %v3710_v38  ;;  %v2047_v42 = vsel %vm2046_vm6, %v2044_v40, %v3709_v34 }
 0x664   : > { %v2049_v43 = vpack.c.bf16 %v2048_v41, %v2047_v42 }
 0x666   : > { %3579 = vmatmul.mubr.bf16.vlgmr.msra.gmra.mxu0 %v2049_v43  ;;  %v3274_v43 = vld [vmem:[%s740_s15] ss:$0 sm:$0xff] }
 0x667   : > { %2494 = vmatprep.mubr.bf16.mxu0 %v4055_v29  ;;  %2463 = vmatpush1.bf16.msra.mxu0 %v3754_v61  ;;  %v3802_v61 = vld [vmem:[%s4376_s16 + $0xb8] sm:$0xff]  }
 0x668   : > { %2464 = vmatprep.subr.bf16.mxu0 %v3762_v8  ;;  %v3813_v8 = vld [vmem:[%s4376_s16 + $0x20] sm:$0xff]  }
 0x66b   : > { %2465 = vmatpush1.bf16.msra.mxu0 %v3760_v11  ;;  %v3815_v11 = vld [vmem:[%s4376_s16 + $0x58] sm:$0xff]  }
 0x66c   : > { %2466 = vmatprep.subr.bf16.mxu0 %v3768_v9  ;;  %v3817_v9 = vld [vmem:[%s4376_s16 + $0x18] sm:$0xff]  }
 0x66f   : > { %2467 = vmatpush1.bf16.msra.mxu0 %v3766_v15  ;;  %v3819_v15 = vld [vmem:[%s4376_s16 + $0x50] sm:$0xff]  }
 0x670   : > { %2468 = vmatprep.subr.bf16.mxu0 %v3774_v19  ;;  %v3823_v19 = vld [vmem:[%s4376_s16 + $0x48] sm:$0xff]  }
 0x673   : > { %2469 = vmatpush1.bf16.msra.mxu0 %v3772_v17  ;;  %v3822_v17 = vld [vmem:[%s4376_s16 + $0x90] sm:$0xff]  }
 0x674   : > { %2470 = vmatprep.subr.bf16.mxu0 %v3780_v21  ;;  %v3825_v21 = vld [vmem:[%s4376_s16 + $0x8] sm:$0xff]  }
 0x677   : > { %2471 = vmatpush1.bf16.msra.mxu0 %v3778_v23  ;;  %v3827_v23 = vld [vmem:[%s4376_s16 + $0x40] sm:$0xff]  }
 0x678   : > { %2472 = vmatprep.subr.bf16.mxu0 %v3786_v6  ;;  %v3829_v6 = vld [vmem:[%s4376_s16] sm:$0xff]  }
 0x67b   : > { %2473 = vmatpush1.bf16.msra.mxu0 %v3784_v27  ;;  %v2237_v27 = vld [vmem:[%s4364_s11] sm:$0xf] }
 0x67c   : > { %2474 = vmatprep.subr.bf16.mxu0 %v3792_v12  ;;  %v2242_v12 = vrot.slane %v2237_v27, %v845_v60  ;;  %v2250_v30 = vrot.slane %v2237_v27, %v853_v57  ;;  %v2254_v32 = vrot.slane %v2237_v27, %v2253_v28 }
 0x67f   : > { %2475 = vmatpush1.bf16.msra.mxu0 %v3790_v31  ;;  %v2246_v31 = vrot.slane %v2237_v27, %v849_v59 }
 0x680   : > { %2476 = vmatprep.subr.bf16.mxu0 %v3798_v33 }
 0x683   : > { %2477 = vmatpush1.bf16.msra.mxu0 %v3796_v26 }
 0x684   : > { %3424 = vmatprep.subr.bf16.mxu0 %v3800_v54 }
 0x726   : > { %v2155_v47 = vpop.f32.mrf.mxu0 }
 0x727   : > { %v2156_v45 = vadd.f32 %v3265_v44, %v2155_v47 }
 0x728   : > { %v3580_v46 = vpop.f32.mrf.mxu0 }
 0x729   : > { %v4659_v49 = vadd.f32 %v3887_v48, %v2156_v45  ;;  %v3275_v46 = vld [vmem:[%s743_s3] ss:$0 sm:$0xff] }
 0x72a   : > { %v2158_v50 = vpop.f32.mrf.mxu0 }
 0x72b   : > { %v2159_v51 = vadd.f32 %v3265_v44, %v2158_v50  ;;  %2166 = vadd.xlane.f32.xlu1 %v4659_v49 }
 0x72c   : > { %v3581_v52 = vpop.f32.mrf.mxu0 }
 0x72d   : > { %v4662_v29 = vadd.f32 %v3888_v53, %v2159_v51  ;;  %v3799_v53 = vld [vmem:[%s4376_s16 + $0x78] sm:$0xff]  }
 0x72e   : > { %3402 = vmatprep.subr.bf16.mxu1 %v3799_v53 }
 0x72f   : > { %2168 = vadd.xlane.f32.xlu0 %v4662_v29 }
 0x7b4   : > { %v2167_v63 = vpop.xlane.xlu1 %2166 }
 0x7b5   : > { %v2170_v0 = vmul.f32 0.0078125, %v2167_v63  ;;  %v3804_v63 = vld [vmem:[%s4376_s16 + $0xf0] sm:$0xff]  }
 0x7b7   : > { %v4670_v1 = vsub.f32 %v4659_v49, %v2170_v0  ;;  %v3805_v0 = vld [vmem:[%s4376_s16 + $0x30] sm:$0xff]  }
 0x7b8   : > { %v2169_v3 = vpop.xlane.xlu0 %2168 }
 0x7b9   : > { %v2171_v4 = vmul.f32 0.0078125, %v2169_v3  ;;  %v2174_v18 = vmul.f32 %v4670_v1, %v4670_v1  ;;  %v3807_v3 = vld [vmem:[%s4376_s16 + $0x68] sm:$0xff]  }
 0x7bb   : > { %v4675_v5 = vsub.f32 %v4662_v29, %v2171_v4  ;;  %2176 = vadd.xlane.f32.xlu0 %v2174_v18  ;;  %v3808_v4 = vld [vmem:[%s4376_s16 + $0xe8] sm:$0xff]  }
 0x7bc   : > { %v3809_v18 = vld [vmem:[%s4376_s16 + $0x28] sm:$0xff]  }
 0x7bd   : > { %v2175_v7 = vmul.f32 %v4675_v5, %v4675_v5 }
 0x7bf   : > { %2178 = vadd.xlane.f32.xlu0 %v2175_v7  ;;  %v3811_v7 = vld [vmem:[%s4376_s16 + $0x60] sm:$0xff]  }
 0x844   : > { %v2177_v36 = vpop.xlane.xlu0 %2176 }
 0x845   : > { %v2180_v37 = vmul.f32 0.0078125, %v2177_v36 }
 0x847   : > { %v2182_v38 = vadd.f32 1e-05, %v2180_v37 }
 0x848   : > { %v2179_v34 = vpop.xlane.xlu0 %2178 }
 0x849   : > { %3867 = vrsqrt.f32 %v2182_v38  ;;  %v2181_v39 = vmul.f32 0.0078125, %v2179_v34 }
 0x84b   : > { %v2183_v40 = vadd.f32 1e-05, %v2181_v39 }
 0x84d   : > { %3869 = vrsqrt.f32 %v2183_v40 }
 0x856   : > { %v3868_v41 = vpop.eup %3867 }
 0x857   : > { %v2186_v42 = vmul.f32 %v3868_v41, %v4670_v1  ;;  %v3806_v1 = vld [vmem:[%s4376_s16 + $0xb0] sm:$0xff]  }
 0x859   : > { %v2194_v45 = vmul.f32 %v3274_v43, %v2186_v42 }
 0x85a   : > { %v3870_v44 = vpop.eup %3869 }
 0x85b   : > { %v2187_v47 = vmul.f32 %v3870_v44, %v4675_v5  ;;  %v2202_v50 = vadd.f32 %v3275_v46, %v2194_v45  ;;  %v3810_v5 = vld [vmem:[%s4376_s16 + $0xa8] sm:$0xff]   ;;  %s4890_s16 = sld [smem:[#allocation24_spill]] (!%p3341_p5) }
 0x85d   : > { %v2195_v48 = vmul.f32 %v3274_v43, %v2187_v47 }
 0x85f   : > { %v2203_v51 = vadd.f32 %v3275_v46, %v2195_v48 }
 0x861   : > { %v2204_v52 = vpack.c.bf16 %v2203_v51, %v2202_v50 }
 0x863   : > { %2452 = vmatmul.mubr.bf16.vlgmr.msra.gmra.mxu1 %v2204_v52  ;;  %2495 = vmatmul.mubr.bf16.vlgmr.msra.gmra.mxu0 %v2204_v52 }
 0x864   : > { %3403 = vmatpush3.bf16.msra.mxu1 %v3801_v58  ;;  %3425 = vmatpush3.bf16.msra.mxu0 %v3802_v61 }
 0x865   : > { %3404 = vmatprep.subr.bf16.mxu1 %v3803_v62  ;;  %3426 = vmatprep.subr.bf16.mxu0 %v3804_v63 }
 0x868   : > { %3405 = vmatpush3.bf16.msra.mxu1 %v3805_v0  ;;  %3427 = vmatpush3.bf16.msra.mxu0 %v3806_v1 }
 0x869   : > { %3406 = vmatprep.subr.bf16.mxu1 %v3807_v3  ;;  %3428 = vmatprep.subr.bf16.mxu0 %v3808_v4 }
 0x86c   : > { %3407 = vmatpush3.bf16.msra.mxu1 %v3809_v18  ;;  %3429 = vmatpush3.bf16.msra.mxu0 %v3810_v5 }
 0x86d   : > { %3408 = vmatprep.subr.bf16.mxu1 %v3811_v7  ;;  %3430 = vmatprep.subr.bf16.mxu0 %v3812_v2 }
 0x870   : > { %3409 = vmatpush3.bf16.msra.mxu1 %v3813_v8  ;;  %3431 = vmatpush3.bf16.msra.mxu0 %v3814_v10 }
 0x871   : > { %3410 = vmatprep.subr.bf16.mxu1 %v3815_v11  ;;  %3432 = vmatprep.subr.bf16.mxu0 %v3816_v13 }
 0x874   : > { %3411 = vmatpush3.bf16.msra.mxu1 %v3817_v9  ;;  %3433 = vmatpush3.bf16.msra.mxu0 %v3818_v14 }
 0x875   : > { %3412 = vmatprep.subr.bf16.mxu1 %v3819_v15  ;;  %3434 = vmatprep.subr.bf16.mxu0 %v3820_v55 }
 0x878   : > { %3413 = vmatpush3.bf16.msra.mxu1 %v3821_v16  ;;  %3435 = vmatpush3.bf16.msra.mxu0 %v3822_v17 }
 0x879   : > { %3414 = vmatprep.subr.bf16.mxu1 %v3823_v19  ;;  %3436 = vmatprep.subr.bf16.mxu0 %v3824_v20 }
 0x87c   : > { %3415 = vmatpush3.bf16.msra.mxu1 %v3825_v21  ;;  %3437 = vmatpush3.bf16.msra.mxu0 %v3826_v22 }
 0x87d   : > { %3416 = vmatprep.subr.bf16.mxu1 %v3827_v23  ;;  %3438 = vmatprep.subr.bf16.mxu0 %v3828_v24 }
 0x880   : > { %3417 = vmatpush3.bf16.msra.mxu1 %v3829_v6  ;;  %3439 = vmatpush3.bf16.msra.mxu0 %v3830_v25 }
 0x923   : > { %v2453_v33 = vpop.f32.mrf.mxu1  ;;  %v2496_v35 = vpop.f32.mrf.mxu0 }
 0x924   : > { %v4759_v26 = vadd.f32 %v2453_v33, %v2242_v12  ;;  %v4761_v36 = vadd.f32 %v2496_v35, %v2250_v30 }
 0x925   : > { %v2455_v37 = vpop.f32.mrf.mxu1  ;;  %v2498_v38 = vpop.f32.mrf.mxu0 }
 0x926   : > { %v2513_v34 = vmul.f32 0.044715, %v4759_v26  ;;  %v2515_v39 = vmul.f32 0.044715, %v4761_v36  ;;  %v2456_v60 = vadd.f32 %v2455_v37, %v2246_v31  ;;  %v4765_v40 = vadd.f32 %v2498_v38, %v2254_v32 }
 0x927   : > { %v2457_v57 = vpop.f32.mrf.mxu1  ;;  %v2500_v41 = vpop.f32.mrf.mxu0  ;;  %v2505_v37 = vmul.f32 0.5, %v4759_v26 }
 0x928   : > { %v2521_v56 = vmul.f32 %v2513_v34, %v4759_v26  ;;  %v2523_v59 = vmul.f32 %v2515_v39, %v4761_v36  ;;  %v2514_v42 = vmul.f32 0.044715, %v2456_v60  ;;  %v2516_v43 = vmul.f32 0.044715, %v4765_v40 }
 0x929   : > { %v2458_v44 = vadd.f32 %v2457_v57, %v2242_v12  ;;  %v4770_v47 = vadd.f32 %v2500_v41, %v2250_v30  ;;  %v2459_v45 = vpop.f32.mrf.mxu1  ;;  %v2502_v46 = vpop.f32.mrf.mxu0  ;;  %v2506_v33 = vmul.f32 0.5, %v2456_v60 }
 0x92a   : > { %v2529_v48 = vmul.f32 %v2521_v56, %v4759_v26  ;;  %v2531_v50 = vmul.f32 %v2523_v59, %v4761_v36  ;;  %v2522_v51 = vmul.f32 %v2514_v42, %v2456_v60  ;;  %v2524_v52 = vmul.f32 %v2516_v43, %v4765_v40 }
 0x92b   : > { %v2517_v53 = vmul.f32 0.044715, %v2458_v44  ;;  %v2519_v54 = vmul.f32 0.044715, %v4770_v47  ;;  %v2460_v58 = vadd.f32 %v2459_v45, %v2246_v31  ;;  %v2503_v61 = vadd.f32 %v2502_v46, %v2254_v32 }
 0x92c   : > { %v2537_v62 = vadd.f32 %v2529_v48, %v4759_v26  ;;  %v2539_v63 = vadd.f32 %v2531_v50, %v4761_v36  ;;  %v2530_v0 = vmul.f32 %v2522_v51, %v2456_v60  ;;  %v2532_v1 = vmul.f32 %v2524_v52, %v4765_v40 }
 0x92d   : > { %v2525_v3 = vmul.f32 %v2517_v53, %v2458_v44  ;;  %v2527_v4 = vmul.f32 %v2519_v54, %v4770_v47  ;;  %v2518_v18 = vmul.f32 0.044715, %v2460_v58  ;;  %v2520_v5 = vmul.f32 0.044715, %v2503_v61 }
 0x92e   : > { %v2545_v7 = vmul.f32 0.7978846, %v2537_v62  ;;  %v2547_v2 = vmul.f32 0.7978846, %v2539_v63  ;;  %v2538_v8 = vadd.f32 %v2530_v0, %v2456_v60  ;;  %v2540_v15 = vadd.f32 %v2532_v1, %v4765_v40 }
 0x92f   : > { %v2533_v10 = vmul.f32 %v2525_v3, %v2458_v44  ;;  %v2535_v11 = vmul.f32 %v2527_v4, %v4770_v47  ;;  %v2526_v13 = vmul.f32 %v2518_v18, %v2460_v58  ;;  %v2528_v9 = vmul.f32 %v2520_v5, %v2503_v61 }
 0x930   : > { %v2546_v14 = vmul.f32 0.7978846, %v2538_v8  ;;  %3871 = vtanh.f32 %v2545_v7  ;;  %v2548_v20 = vmul.f32 0.7978846, %v2540_v15  ;;  %v2509_v57 = vmul.f32 0.5, %v2458_v44 }
 0x931   : > { %v2541_v55 = vadd.f32 %v2533_v10, %v2458_v44  ;;  %v2543_v16 = vadd.f32 %v2535_v11, %v4770_v47  ;;  %v2534_v17 = vmul.f32 %v2526_v13, %v2460_v58  ;;  %3873 = vtanh.f32 %v2547_v2 }
 0x932   : > { %v2536_v19 = vmul.f32 %v2528_v9, %v2503_v61  ;;  %3875 = vtanh.f32 %v2546_v14  ;;  %v2510_v42 = vmul.f32 0.5, %v2460_v58  ;;  %v2511_v45 = vmul.f32 0.5, %v4770_v47 }
 0x933   : > { %v2549_v21 = vmul.f32 0.7978846, %v2541_v55  ;;  %v2551_v22 = vmul.f32 0.7978846, %v2543_v16  ;;  %v2542_v23 = vadd.f32 %v2534_v17, %v2460_v58  ;;  %3877 = vtanh.f32 %v2548_v20 }
 0x934   : > { %v2544_v24 = vadd.f32 %v2536_v19, %v2503_v61  ;;  %v2508_v48 = vmul.f32 0.5, %v4765_v40  ;;  %v2512_v50 = vmul.f32 0.5, %v2503_v61  ;;  %v2507_v26 = vmul.f32 0.5, %v4761_v36  ;;  %v3308_v36 = vld [vmem:[%s750_s26] ss:$0 sm:$0xff] }
 0x935   : > { %3879 = vtanh.f32 %v2549_v21  ;;  %v2550_v6 = vmul.f32 0.7978846, %v2542_v23 }
 0x936   : > { %3881 = vtanh.f32 %v2551_v22  ;;  %v2552_v25 = vmul.f32 0.7978846, %v2544_v24 }
 0x937   : > { %3883 = vtanh.f32 %v2550_v6 }
 0x938   : > { %3885 = vtanh.f32 %v2552_v25 }
 0x93d   : > { %v3872_v27 = vpop.eup %3871 }
 0x93e   : > { %v3874_v28 = vpop.eup %3873  ;;  %v2561_v41 = vadd.f32 1.0, %v3872_v27 }
 0x93f   : > { %v3876_v12 = vpop.eup %3875  ;;  %v2563_v46 = vadd.f32 1.0, %v3874_v28 }
 0x940   : > { %v3878_v30 = vpop.eup %3877  ;;  %v2562_v35 = vadd.f32 1.0, %v3876_v12  ;;  %v2569_v63 = vmul.f32 %v2561_v41, %v2505_v37 }
 0x941   : > { %v2564_v39 = vadd.f32 1.0, %v3878_v30  ;;  %v2571_v58 = vmul.f32 %v2563_v46, %v2507_v26 }
 0x942   : > { %v3880_v31 = vpop.eup %3879  ;;  %v2570_v52 = vmul.f32 %v2562_v35, %v2506_v33 }
 0x943   : > { %v3882_v32 = vpop.eup %3881  ;;  %v2565_v38 = vadd.f32 1.0, %v3880_v31  ;;  %v2572_v44 = vmul.f32 %v2564_v39, %v2508_v48 }
 0x944   : > { %v3884_v34 = vpop.eup %3883  ;;  %v2567_v56 = vadd.f32 1.0, %v3882_v32 }
 0x945   : > { %v3886_v59 = vpop.eup %3885  ;;  %v2566_v43 = vadd.f32 1.0, %v3884_v34  ;;  %v2573_v60 = vmul.f32 %v2565_v38, %v2509_v57 }
 0x946   : > { %v2568_v51 = vadd.f32 1.0, %v3886_v59  ;;  %v2575_v54 = vmul.f32 %v2567_v56, %v2511_v45 }
 0x947   : > { %v2574_v53 = vmul.f32 %v2566_v43, %v2510_v42  ;;  %v2577_v3 = vpack.c.bf16 %v2573_v60, %v2569_v63 }
 0x948   : > { %v2576_v62 = vmul.f32 %v2568_v51, %v2512_v50  ;;  %v2579_v47 = vpack.c.bf16 %v2575_v54, %v2571_v58 }
 0x949   : > { %v2578_v0 = vpack.c.bf16 %v2574_v53, %v2570_v52 }
 0x94a   : > { %v2580_v1 = vpack.c.bf16 %v2576_v62, %v2572_v44 }
 0x94b   : > { %2876 = vmatprep.mubr.bf16.mxu1 %v2578_v0 }
 0x94c   : > { %2917 = vmatprep.mubr.bf16.mxu0 %v2580_v1  ;;  %2877 = vmatmul.mubr.bf16.vlgmr.msra.gmra.mxu1 %v2577_v3 }
 0x94d   : > { %2918 = vmatmul.mubr.bf16.vlgmr.msra.gmra.mxu0 %v2579_v47 }
 0xa0c   : > { %v3418_v40 = vpop.f32.mrf.mxu1 }
 0xa0d   : > { %v3440_v61 = vpop.f32.mrf.mxu0 }
 0xa0e   : > { %v3419_v4 = vpop.f32.mrf.mxu1 }
 0xa0f   : > { %v3420_v18 = vadd.f32 %v3419_v4, %v3418_v40  ;;  %v3441_v5 = vpop.f32.mrf.mxu0 }
 0xa10   : > { %v3421_v7 = vpop.f32.mrf.mxu1  ;;  %v3442_v8 = vadd.f32 %v3441_v5, %v3440_v61 }
 0xa11   : > { %v2879_v2 = vadd.f32 %v3420_v18, %v3308_v36  ;;  %v3443_v10 = vpop.f32.mrf.mxu0 }
 0xa12   : > { %v3422_v11 = vpop.f32.mrf.mxu1 }
 0xa13   : > { %v2920_v13 = vadd.f32 %v3442_v8, %v2879_v2  ;;  %v3423_v9 = vadd.f32 %v3422_v11, %v3421_v7  ;;  %v3444_v14 = vpop.f32.mrf.mxu0 }
 0xa14   : > { %v3445_v16 = vadd.f32 %v3444_v14, %v3443_v10 }
 0xa15   : > { %v2926_v15 = vadd.f32 %v2920_v13, %v4659_v49  ;;  %v2882_v55 = vadd.f32 %v3423_v9, %v3308_v36 }
 0xa17   : > { %2928 = vst [vmem:[#allocation8] sm:$0xff] %v2926_v15  ;;  %v2923_v17 = vadd.f32 %v3445_v16, %v2882_v55  ;;  %2933 = sbr.rel (%p3341_p5) target bundleno = 2899 (0xb53), region = 100 }
 0xa19   : > { %v2927_v19 = vadd.f32 %v2923_v17, %v4662_v29 }
 0xa1b   : > { %2929 = vst [vmem:[#allocation8 + $0x8] sm:$0xff] %v2927_v19 }
 0xa1c   : > { %2936 = vadd.xlane.f32.xlu0 %v2926_v15  ;;  %v3342_v33 = vld [vmem:[%s4890_s16] ss:$0 sm:$0xff] }
 0xa1d   : > { %v3343_v37 = vld [vmem:[%s4891_s4] ss:$0 sm:$0xff] }
 0xa20   : > { %2938 = vadd.xlane.f32.xlu0 %v2927_v19 }
 0xaa5   : > { %v2937_v20 = vpop.xlane.xlu0 %2936 }
 0xaa6   : > { %v2940_v21 = vmul.f32 0.0078125, %v2937_v20 }
 0xaa8   : > { %v2942_v22 = vsub.f32 %v2926_v15, %v2940_v21 }
 0xaa9   : > { %v2939_v23 = vpop.xlane.xlu0 %2938 }
 0xaaa   : > { %v2941_v24 = vmul.f32 0.0078125, %v2939_v23  ;;  %v2944_v6 = vmul.f32 %v2942_v22, %v2942_v22 }
 0xaac   : > { %v2943_v25 = vsub.f32 %v2927_v19, %v2941_v24  ;;  %2946 = vadd.xlane.f32.xlu1 %v2944_v6 }
 0xaae   : > { %v2945_v49 = vmul.f32 %v2943_v25, %v2943_v25 }
 0xab0   : > { %2948 = vadd.xlane.f32.xlu1 %v2945_v49 }
 0xb35   : > { %v2947_v27 = vpop.xlane.xlu1 %2946 }
 0xb36   : > { %v2950_v28 = vmul.f32 0.0078125, %v2947_v27 }
 0xb38   : > { %v2952_v12 = vadd.f32 1e-05, %v2950_v28 }
 0xb39   : > { %v2949_v29 = vpop.xlane.xlu1 %2948 }
 0xb3a   : > { %3889 = vrsqrt.f32 %v2952_v12  ;;  %v2951_v30 = vmul.f32 0.0078125, %v2949_v29 }
 0xb3c   : > { %v2953_v31 = vadd.f32 1e-05, %v2951_v30 }
 0xb3e   : > { %3891 = vrsqrt.f32 %v2953_v31 }
 0xb47   : > { %v3890_v32 = vpop.eup %3889 }
 0xb48   : > { %v2956_v35 = vmul.f32 %v3890_v32, %v2942_v22 }
 0xb4a   : > { %v2964_v38 = vmul.f32 %v3342_v33, %v2956_v35 }
 0xb4b   : > { %v3892_v34 = vpop.eup %3891 }
 0xb4c   : > { %v2972_v39 = vadd.f32 %v3343_v37, %v2964_v38  ;;  %v2957_v57 = vmul.f32 %v3892_v34, %v2943_v25 }
 0xb4e   : > { %2974 = vst [vmem:[#allocation8] sm:$0xff] %v2972_v39  ;;  %v2965_v41 = vmul.f32 %v3342_v33, %v2957_v57 }
 0xb50   : > { %v2973_v56 = vadd.f32 %v3343_v37, %v2965_v41 }
 0xb52   : > { %2975 = vst [vmem:[#allocation8 + $0x8] sm:$0xff] %v2973_v56 }
 0xb53 PF: > { %p3607_p6 = scmp.eq.s32.totalorder %s4167_s25, 2  ;;  %s4060_s22 = smov [#allocation8]  }
 0xb54   : > { %s2987_s27 = sshll.u32 %s4060_s22, 4  ;;  %s2988_s27 = int_to_ptr.vmem [resolvable:$true] %s2987_s27 }
 0xb55   : > { %s3977_s17 = scalar_lea.vmem %s2988_s27, 256  ;;  %p3984_p12 = scmp.lt.s32.totalorder %s2988_s27, %s2988_s27 }
 0xb56   : > { %p3978_p9 = scmp.ne.s32.totalorder %s2988_s27, %s3977_s17  ;;  %p3985_p0 = scmp.lt.s32.totalorder %s3977_s17, %s3977_s17 }
 0xb58   : > { %p3979_p11 = pnand %p3978_p9, %p3607_p6  ;;  %p3986_p1 = por %p3985_p0, %p3984_p12 }
 0xb5a   : > { %p3980_p7 = pneg %p3979_p11 }
 0xb5c   : > { %p3987_p2 = pnand %p3986_p1, %p3980_p7 }
 0xb5e   : > { %3990 = shalt.err (!%p3987_p2)
}
 0xb5f   : > { %s4061_s24 = smov 128   ;;  %s4062_s21 = smov 8  }
 0xb60   : > { %s4892_s29 = sld [smem:[#allocation26_spill]] }
 0xb66   : > { %3593 = dma.vmem_to_hbm [thread:$0]  (%p3607_p6), %s2988_s27, 256, %s4892_s29, [#allocation4], %s4061_s24, %s4061_s24, %s4062_s21  }
 0xb67   : > { %4026 = dma.done.wait (%p3607_p6), [#allocation4], 256  }
 0xb68   : > { %4028 = vsyncadd (%p3607_p6), [#allocation4], 4294967040 }
 0xb69 PF: > { %s4893_s24 = sld [smem:[#allocation14_spill]] }
 0xb6a   : > { %s4894_s21 = sld [smem:[#allocation12_spill]] }
 0xb6b   : > { %s4895_s22 = sld [smem:[#allocation13_spill]] }
 0xb6c   : > { %s4896_s23 = sld [smem:[#allocation15_spill]] }
 0xb6f   : > { %p31_p3 = scmp.ge.s32.totalorder %s4893_s24, 5  }
 0xb71   :  { %33 = sbr.rel (!%p31_p3) target bundleno = 19 (0x13), region = 189 }
 0xb76   :  { %3014 = vsyncpa [#allocation3], 1 }
 0xb77   :  { %3016 = vsyncpa [#allocation3 + $0x1], 1 }
 0xb78   :  { %3017 = vsyncpa [#allocation6], 1 }
 0xb79   :  { %3019 = vsyncpa [#allocation6 + $0x1], 1 }
 0xb7a   :  { %3020 = vsyncpa [#allocation4], 1 }
 0xb7b   :  { %3022 = vsyncpa [#allocation4 + $0x1], 1 }

</bundles_post_ra>
